<compile_context>
chip_gen: v5e
topology: v5e:2x2
jax: 0.10.0
libtpu: 0.0.40
codegen_flags: <defaults>
</compile_context>

<pallas_src>
import jax
import jax.numpy as jnp
from jax import lax
from jax.experimental import pallas as pl
from jax.experimental.pallas import tpu as pltpu

_LANES = 128  # pad all feature/channel/class dims to full lane width


# ---------------------------------------------------------------------------
# Fused Pallas kernel: (conv1 + stride-2 gather) -> conv2 -> head
# ---------------------------------------------------------------------------
def _fused_forward_kernel(p_ref, mask_ref, w1_ref, b1_ref, w2_ref, b2_ref,
                          wh_ref, bh_ref, o_ref):
    bm, m2, kp = p_ref.shape           # [batch block, Ho*Wo, 128]
    kg = w1_ref.shape[1]               # 9 * 128 fused (tap, channel) dim

    # conv1 fused with conv2's stride-2 spatial gather: one MXU dot (K=128).
    sp = p_ref[...].reshape(bm * m2, kp)                         # bf16
    z1 = jnp.dot(sp, w1_ref[...], preferred_element_type=jnp.float32)
    f1 = jnp.maximum(z1 + b1_ref[...], 0.0)                      # [bm*64, 1152]
    # conv2's zero-padding ring as an explicit 0/1 mask (broadcast over batch).
    f1 = (f1.reshape(bm, m2, kg) * mask_ref[...][None]).reshape(bm * m2, kg)

    # conv2: all 9 taps merged into the contraction dim -> one MXU dot (K=1152).
    z2 = jnp.dot(f1.astype(jnp.bfloat16), w2_ref[...],
                 preferred_element_type=jnp.float32)
    f2 = jnp.maximum(z2 + b2_ref[...], 0.0)                      # [bm*64, 128]

    # head: linear before the pool keeps the dot at M = bm*64 (MXU-friendly);
    # the 1/(Ho*Wo) global-average-pool scale is folded into wh.
    zh = jnp.dot(f2.astype(jnp.bfloat16), wh_ref[...],
                 preferred_element_type=jnp.float32)             # [bm*64, 128]
    logits = jnp.sum(zh.reshape(bm, m2, zh.shape[-1]), axis=1) + bh_ref[...]
    o_ref[...] = logits[None].astype(o_ref.dtype)                # [1, bm, 128]


# ---------------------------------------------------------------------------
# Wrapper-side im2col: 5x5xCin super-patch per conv2 output position
# (the input window feeding the 3x3 block of conv1 outputs that conv2's
#  3x3 / stride-2 / pad-1 taps read).
# ---------------------------------------------------------------------------
def _build_superpatches(x_nhwc):
    n, h, w, c = x_nhwc.shape
    ho, wo = h // 2, w // 2
    xp = jnp.pad(x_nhwc, ((0, 0), (2, 2), (2, 2), (0, 0)))       # 2-halo
    cols = []
    for u in range(5):
        for v in range(5):
            cols.append(xp[:, u:u + 2 * ho:2, v:v + 2 * wo:2, :])  # [n,ho,wo,c]
    sp = jnp.stack(cols, axis=3).reshape(n, ho * wo, 25 * c)     # (u,v,ci) order
    return jnp.pad(sp, ((0, 0), (0, 0), (0, _LANES - 25 * c)))   # K -> 128


# ---------------------------------------------------------------------------
# One-time parameter packing
# ---------------------------------------------------------------------------
def pack_params(params, *, h, w):
    c1, cin, kh, kw = params["w1"].shape
    c2 = params["w2"].shape[0]
    ncls = params["w_head"].shape[1]
    ho, wo = h // 2, w // 2
    su, sv = kh + 2, kw + 2              # 5x5 super-patch window (stride 2)
    ksp = su * sv * cin                  # 100 raw super-patch features
    kg = kh * kw * _LANES                # 1152 fused (tap, channel) dim

    # Fused conv1 + gather weight:
    #   W1g[(u,v,ci), (i,j)*128 + co] = w1[co, ci, u-i, v-j]   (0 outside tap).
    # NOTE: padded output lanes (co >= c1) are explicitly zero here AND in b1t,
    # and the corresponding rows of w2p are zero, so padded channels cannot
    # leak even if the activation function changes.
    w1_t = jnp.transpose(params["w1"], (2, 3, 1, 0))             # [kh,kw,ci,co]
    w1g = jnp.zeros((su, sv, cin, kh * kw, _LANES), jnp.float32)
    for i in range(kh):
        for j in range(kw):
            k = i * kw + j
            w1g = w1g.at[i:i + kh, j:j + kw, :, k, :c1].set(w1_t)
    w1g = jnp.pad(w1g.reshape(ksp, kg), ((0, _LANES - ksp), (0, 0)))

    # conv1 bias tiled per tap block.
    b1t = jnp.zeros((kh * kw, _LANES), jnp.float32)
    b1t = b1t.at[:, :c1].set(jnp.broadcast_to(params["b1"][None, :],
                                              (kh * kw, c1)))
    b1t = b1t.reshape(1, kg)

    # 0/1 validity mask (per conv2 output position & tap) for the zero padding.
    oh = jnp.arange(ho)[:, None]
    ow = jnp.arange(wo)[None, :]
    blocks = []
    for i in range(kh):
        for j in range(kw):
            r = 2 * oh + i - 1
            c = 2 * ow + j - 1
            valid = (r >= 0) & (r < h) & (c >= 0) & (c < w)      # [ho, wo]
            blocks.append(jnp.broadcast_to(valid[:, :, None], (ho, wo, _LANES)))
    mask = jnp.stack(blocks, axis=2).astype(jnp.float32).reshape(ho * wo, kg)

    # conv2 weight with taps merged into K: W2p[(i,j)*128 + ci, co] = w2[co,ci,i,j]
    w2_t = jnp.transpose(params["w2"], (2, 3, 1, 0)).reshape(kh * kw, c1, c2)
    w2p = jnp.zeros((kh * kw, _LANES, _LANES), jnp.float32)
    w2p = w2p.at[:, :c1, :c2].set(w2_t).reshape(kg, _LANES)

    b2p = jnp.zeros((1, _LANES), jnp.float32).at[0, :c2].set(params["b2"])

    # head: pad + fold the global-average-pool scale into the weight.
    whp = jnp.zeros((_LANES, _LANES), jnp.float32)
    whp = whp.at[:c2, :ncls].set(params["w_head"]) / float(ho * wo)
    bhp = jnp.zeros((1, _LANES), jnp.float32).at[0, :ncls].set(params["b_head"])

    return {
        "w1g": w1g.astype(jnp.bfloat16),
        "b1t": b1t,
        "mask": mask,
        "w2p": w2p.astype(jnp.bfloat16),
        "b2p": b2p,
        "whp": whp.astype(jnp.bfloat16),
        "bhp": bhp,
    }


# ---------------------------------------------------------------------------
# WrapperWeightsManager.forward equivalent (backbone -> pick level -> head)
# ---------------------------------------------------------------------------
def wrapper_forward(x_nchw, packed, *, num_classes, feature_levels=(-1,)):
    # Only the deepest feature level feeds the head in this instantiation, so
    # the fused kernel never materializes the shallower feature map.
    assert tuple(feature_levels) == (-1,)

    x = jnp.transpose(x_nchw, (0, 2, 3, 1))                      # NCHW -> NHWC
    sp = _build_superpatches(x).astype(jnp.bfloat16)             # [N, Ho*Wo, 128]
    n, m2, kp = sp.shape
    kg = packed["w1g"].shape[1]

    # Batch folding: single-TC chips (v5e/v6e) run one grid step with the whole
    # batch folded into M; dual-TC v7x gets one "parallel" step per TensorCore.
    try:
        kind = jax.devices()[0].device_kind.lower()
    except Exception:  # pragma: no cover - defensive default
        kind = ""
    n_tc = 2 if "v7" in kind else 1
    bm = n if n_tc == 1 else max(1, pl.cdiv(n, n_tc))
    n_grid = pl.cdiv(n, bm)
    n_pad = n_grid * bm
    if n_pad != n:
        sp = jnp.pad(sp, ((0, n_pad - n), (0, 0), (0, 0)))

    flops_per_step = 2 * bm * m2 * (kp * kg + kg * _LANES + _LANES * _LANES)
    const_bytes = (2 * (packed["w1g"].size + packed["w2p"].size
                        + packed["whp"].size)
                   + 4 * (packed["mask"].size + packed["b1t"].size
                          + packed["b2p"].size + packed["bhp"].size))

    out = pl.pallas_call(
        _fused_forward_kernel,
        out_shape=jax.ShapeDtypeStruct((n_grid, bm, _LANES), jnp.float32),
        grid=(n_grid,),
        in_specs=[
            pl.BlockSpec((bm, m2, kp), lambda i: (i, 0, 0)),
            pl.BlockSpec(packed["mask"].shape, lambda i: (0, 0)),
            pl.BlockSpec(packed["w1g"].shape, lambda i: (0, 0)),
            pl.BlockSpec(packed["b1t"].shape, lambda i: (0, 0)),
            pl.BlockSpec(packed["w2p"].shape, lambda i: (0, 0)),
            pl.BlockSpec(packed["b2p"].shape, lambda i: (0, 0)),
            pl.BlockSpec(packed["whp"].shape, lambda i: (0, 0)),
            pl.BlockSpec(packed["bhp"].shape, lambda i: (0, 0)),
        ],
        out_specs=pl.BlockSpec((1, bm, _LANES), lambda i: (i, 0, 0)),
        compiler_params=pltpu.CompilerParams(
            dimension_semantics=("parallel",)),
        cost_estimate=pl.CostEstimate(
            flops=n_grid * flops_per_step,
            transcendentals=0,
            bytes_accessed=(2 * sp.size + 4 * n_pad * _LANES
                            + n_grid * const_bytes)),
    )(sp, packed["mask"], packed["w1g"], packed["b1t"], packed["w2p"],
      packed["b2p"], packed["whp"], packed["bhp"])

    return out.reshape(n_pad, _LANES)[:n, :num_classes]


# ---------------------------------------------------------------------------
# Pure-JAX reference (same forward semantics), used for a numerical self-check
# ---------------------------------------------------------------------------
def _reference_forward(x_nchw, params):
    x = jnp.transpose(x_nchw, (0, 2, 3, 1))
    w1 = jnp.transpose(params["w1"], (2, 3, 1, 0))               # OIHW -> HWIO
    w2 = jnp.transpose(params["w2"], (2, 3, 1, 0))
    dn = ("NHWC", "HWIO", "NHWC")
    f1 = lax.conv_general_dilated(x, w1, (1, 1), ((1, 1), (1, 1)),
                                  dimension_numbers=dn,
                                  precision=lax.Precision.HIGHEST)
    f1 = jnp.maximum(f1 + params["b1"], 0.0)
    f2 = lax.conv_general_dilated(f1, w2, (2, 2), ((1, 1), (1, 1)),
                                  dimension_numbers=dn,
                                  precision=lax.Precision.HIGHEST)
    f2 = jnp.maximum(f2 + params["b2"], 0.0)
    pooled = jnp.mean(f2, axis=(1, 2))
    return jnp.dot(pooled, params["w_head"],
                   precision=lax.Precision.HIGHEST) + params["b_head"]


# ---------------------------------------------------------------------------
# Main
# ---------------------------------------------------------------------------
if __name__ == "__main__":
    key = jax.random.PRNGKey(0)
    k_x, k_w1, k_b1, k_w2, k_b2, k_wh, k_bh = jax.random.split(key, 7)

    N, C_IN, H, W = 2, 4, 16, 16
    C1, C2, NUM_CLASSES = 8, 16, 10

    x = jax.random.normal(k_x, (N, C_IN, H, W), dtype=jnp.float32)
    params = {
        "w1": 0.1 * jax.random.normal(k_w1, (C1, C_IN, 3, 3), dtype=jnp.float32),
        "b1": 0.1 * jax.random.normal(k_b1, (C1,), dtype=jnp.float32),
        "w2": 0.1 * jax.random.normal(k_w2, (C2, C1, 3, 3), dtype=jnp.float32),
        "b2": 0.1 * jax.random.normal(k_b2, (C2,), dtype=jnp.float32),
        "w_head": 0.1 * jax.random.normal(k_wh, (C2, NUM_CLASSES), dtype=jnp.float32),
        "b_head": 0.1 * jax.random.normal(k_bh, (NUM_CLASSES,), dtype=jnp.float32),
    }

    packed = pack_params(params, h=H, w=W)               # one-time layout pack
    fwd = jax.jit(lambda inp: wrapper_forward(inp, packed,
                                              num_classes=NUM_CLASSES,
                                              feature_levels=(-1,)))
    out = fwd(x)
    jax.block_until_ready(out)
    assert out.shape == (N, NUM_CLASSES), out.shape

    ref = _reference_forward(x, params)
    # bf16 matmul operands (f32 accumulation) -> slightly looser tolerance.
    assert jnp.allclose(out, ref, atol=2e-2, rtol=2e-2), (
        float(jnp.max(jnp.abs(out - ref))))
    print("KERNEL_OK")
</pallas_src>

<mosaic_0001>
module attributes {stable_mosaic.version = 11 : i64} {
  func.func @_fused_forward_kernel(%arg0: i32, %arg1: memref<2x64x128xbf16, #tpu.memory_space<vmem>>, %arg2: memref<64x1152xf32, #tpu.memory_space<vmem>>, %arg3: memref<128x1152xbf16, #tpu.memory_space<vmem>>, %arg4: memref<1x1152xf32, #tpu.memory_space<vmem>>, %arg5: memref<1152x128xbf16, #tpu.memory_space<vmem>>, %arg6: memref<1x128xf32, #tpu.memory_space<vmem>>, %arg7: memref<128x128xbf16, #tpu.memory_space<vmem>>, %arg8: memref<1x128xf32, #tpu.memory_space<vmem>>, %arg9: memref<1x2x128xf32, #tpu.memory_space<vmem>>) attributes {dimension_semantics = [#tpu.dimension_semantics<parallel>], iteration_bounds = array<i64: 1>, scalar_prefetch = 0 : i64, scratch_operands = 0 : i64, tpu.core_type = #tpu.core_type<tc>, window_params = [{transform_indices = @transform_0, window_bounds = array<i64: 2, 64, 128>}, {pipeline_mode = #tpu.pipeline_mode<synchronous>, transform_indices = @transform_1, window_bounds = array<i64: 64, 1152>}, {pipeline_mode = #tpu.pipeline_mode<synchronous>, transform_indices = @transform_2, window_bounds = array<i64: 128, 1152>}, {pipeline_mode = #tpu.pipeline_mode<synchronous>, transform_indices = @transform_3, window_bounds = array<i64: 1, 1152>}, {pipeline_mode = #tpu.pipeline_mode<synchronous>, transform_indices = @transform_4, window_bounds = array<i64: 1152, 128>}, {pipeline_mode = #tpu.pipeline_mode<synchronous>, transform_indices = @transform_5, window_bounds = array<i64: 1, 128>}, {pipeline_mode = #tpu.pipeline_mode<synchronous>, transform_indices = @transform_6, window_bounds = array<i64: 128, 128>}, {pipeline_mode = #tpu.pipeline_mode<synchronous>, transform_indices = @transform_7, window_bounds = array<i64: 1, 128>}, {transform_indices = @transform_8, window_bounds = array<i64: 1, 2, 128>}]} {
    %c0 = arith.constant 0 : index
    %c0_0 = arith.constant 0 : index
    %c0_1 = arith.constant 0 : index
    %0 = vector.load %arg1[%c0, %c0_0, %c0_1] : memref<2x64x128xbf16, #tpu.memory_space<vmem>>, vector<2x64x128xbf16>
    %1 = vector.shape_cast %0 : vector<2x64x128xbf16> to vector<128x128xbf16>
    %c0_2 = arith.constant 0 : index
    %c0_3 = arith.constant 0 : index
    %2 = vector.load %arg3[%c0_2, %c0_3] : memref<128x1152xbf16, #tpu.memory_space<vmem>>, vector<128x1152xbf16>
    %cst = arith.constant dense<0.000000e+00> : vector<128x1152xf32>
    %3 = tpu.matmul %1, %2, %cst {dimension_numbers = #tpu.dot_dimension_numbers<[1], [0], [0], [1], [0, 0, 1, 1], [], []>} : vector<128x128xbf16>, vector<128x1152xbf16>, vector<128x1152xf32> -> vector<128x1152xf32>
    %c0_4 = arith.constant 0 : index
    %c0_5 = arith.constant 0 : index
    %4 = vector.load %arg4[%c0_4, %c0_5] : memref<1x1152xf32, #tpu.memory_space<vmem>>, vector<1x1152xf32>
    %5 = vector.broadcast %4 : vector<1x1152xf32> to vector<128x1152xf32>
    %6 = arith.addf %3, %5 : vector<128x1152xf32>
    %cst_6 = arith.constant 0.000000e+00 : f32
    %7 = vector.broadcast %cst_6 : f32 to vector<128x1152xf32>
    %8 = arith.maximumf %6, %7 : vector<128x1152xf32>
    %9 = vector.shape_cast %8 : vector<128x1152xf32> to vector<2x64x1152xf32>
    %c0_7 = arith.constant 0 : index
    %c0_8 = arith.constant 0 : index
    %10 = vector.load %arg2[%c0_7, %c0_8] : memref<64x1152xf32, #tpu.memory_space<vmem>>, vector<64x1152xf32>
    %11 = vector.shape_cast %10 : vector<64x1152xf32> to vector<1x64x1152xf32>
    %12 = vector.broadcast %11 : vector<1x64x1152xf32> to vector<2x64x1152xf32>
    %13 = arith.mulf %9, %12 : vector<2x64x1152xf32>
    %14 = vector.shape_cast %13 : vector<2x64x1152xf32> to vector<128x1152xf32>
    %15 = arith.truncf %14 : vector<128x1152xf32> to vector<128x1152xbf16>
    %c0_9 = arith.constant 0 : index
    %c0_10 = arith.constant 0 : index
    %16 = vector.load %arg5[%c0_9, %c0_10] : memref<1152x128xbf16, #tpu.memory_space<vmem>>, vector<1152x128xbf16>
    %cst_11 = arith.constant dense<0.000000e+00> : vector<128x128xf32>
    %17 = tpu.matmul %15, %16, %cst_11 {dimension_numbers = #tpu.dot_dimension_numbers<[1], [0], [0], [1], [0, 0, 1, 1], [], []>} : vector<128x1152xbf16>, vector<1152x128xbf16>, vector<128x128xf32> -> vector<128x128xf32>
    %c0_12 = arith.constant 0 : index
    %c0_13 = arith.constant 0 : index
    %18 = vector.load %arg6[%c0_12, %c0_13] : memref<1x128xf32, #tpu.memory_space<vmem>>, vector<1x128xf32>
    %19 = vector.broadcast %18 : vector<1x128xf32> to vector<128x128xf32>
    %20 = arith.addf %17, %19 : vector<128x128xf32>
    %cst_14 = arith.constant 0.000000e+00 : f32
    %21 = vector.broadcast %cst_14 : f32 to vector<128x128xf32>
    %22 = arith.maximumf %20, %21 : vector<128x128xf32>
    %23 = arith.truncf %22 : vector<128x128xf32> to vector<128x128xbf16>
    %c0_15 = arith.constant 0 : index
    %c0_16 = arith.constant 0 : index
    %24 = vector.load %arg7[%c0_15, %c0_16] : memref<128x128xbf16, #tpu.memory_space<vmem>>, vector<128x128xbf16>
    %cst_17 = arith.constant dense<0.000000e+00> : vector<128x128xf32>
    %25 = tpu.matmul %23, %24, %cst_17 {dimension_numbers = #tpu.dot_dimension_numbers<[1], [0], [0], [1], [0, 0, 1, 1], [], []>} : vector<128x128xbf16>, vector<128x128xbf16>, vector<128x128xf32> -> vector<128x128xf32>
    %26 = vector.shape_cast %25 : vector<128x128xf32> to vector<2x64x128xf32>
    %cst_18 = arith.constant dense<0.000000e+00> : vector<2x128xf32>
    %27 = vector.multi_reduction <add>, %26, %cst_18 [1] : vector<2x64x128xf32> to vector<2x128xf32>
    %c0_19 = arith.constant 0 : index
    %c0_20 = arith.constant 0 : index
    %28 = vector.load %arg8[%c0_19, %c0_20] : memref<1x128xf32, #tpu.memory_space<vmem>>, vector<1x128xf32>
    %29 = vector.broadcast %28 : vector<1x128xf32> to vector<2x128xf32>
    %30 = arith.addf %27, %29 : vector<2x128xf32>
    %31 = vector.shape_cast %30 : vector<2x128xf32> to vector<1x2x128xf32>
    %c0_21 = arith.constant 0 : index
    %c0_22 = arith.constant 0 : index
    %c0_23 = arith.constant 0 : index
    %32 = vector.load %arg9[%c0_21, %c0_22, %c0_23] : memref<1x2x128xf32, #tpu.memory_space<vmem>>, vector<1x2x128xf32>
    tpu.vector_store %arg9[%c0_21, %c0_22, %c0_23], %31 {strides = array<i32>} : memref<1x2x128xf32, #tpu.memory_space<vmem>>, vector<1x2x128xf32>,
    return
  }
  func.func @transform_0(%arg0: i32) -> (i32, i32, i32) {
    %c0_i32 = arith.constant 0 : i32
    %c0_i32_0 = arith.constant 0 : i32
    %c0_i32_1 = arith.constant 0 : i32
    return %arg0, %c0_i32, %c0_i32_0 : i32, i32, i32
  }
  func.func @transform_1(%arg0: i32) -> (i32, i32) {
    %c0_i32 = arith.constant 0 : i32
    %c0_i32_0 = arith.constant 0 : i32
    %c0_i32_1 = arith.constant 0 : i32
    return %c0_i32, %c0_i32_0 : i32, i32
  }
  func.func @transform_2(%arg0: i32) -> (i32, i32) {
    %c0_i32 = arith.constant 0 : i32
    %c0_i32_0 = arith.constant 0 : i32
    %c0_i32_1 = arith.constant 0 : i32
    return %c0_i32, %c0_i32_0 : i32, i32
  }
  func.func @transform_3(%arg0: i32) -> (i32, i32) {
    %c0_i32 = arith.constant 0 : i32
    %c0_i32_0 = arith.constant 0 : i32
    %c0_i32_1 = arith.constant 0 : i32
    return %c0_i32, %c0_i32_0 : i32, i32
  }
  func.func @transform_4(%arg0: i32) -> (i32, i32) {
    %c0_i32 = arith.constant 0 : i32
    %c0_i32_0 = arith.constant 0 : i32
    %c0_i32_1 = arith.constant 0 : i32
    return %c0_i32, %c0_i32_0 : i32, i32
  }
  func.func @transform_5(%arg0: i32) -> (i32, i32) {
    %c0_i32 = arith.constant 0 : i32
    %c0_i32_0 = arith.constant 0 : i32
    %c0_i32_1 = arith.constant 0 : i32
    return %c0_i32, %c0_i32_0 : i32, i32
  }
  func.func @transform_6(%arg0: i32) -> (i32, i32) {
    %c0_i32 = arith.constant 0 : i32
    %c0_i32_0 = arith.constant 0 : i32
    %c0_i32_1 = arith.constant 0 : i32
    return %c0_i32, %c0_i32_0 : i32, i32
  }
  func.func @transform_7(%arg0: i32) -> (i32, i32) {
    %c0_i32 = arith.constant 0 : i32
    %c0_i32_0 = arith.constant 0 : i32
    %c0_i32_1 = arith.constant 0 : i32
    return %c0_i32, %c0_i32_0 : i32, i32
  }
  func.func @transform_8(%arg0: i32) -> (i32, i32, i32) {
    %c0_i32 = arith.constant 0 : i32
    %c0_i32_0 = arith.constant 0 : i32
    %c0_i32_1 = arith.constant 0 : i32
    return %arg0, %c0_i32, %c0_i32_0 : i32, i32, i32
  }
}

</mosaic_0001>

<bundles_post_ra>
// kernel: _lambda_.1
= control target key start
LH: loop header
LB: loop body
LE: loop exit
PB: predicated region body
PF: predicated region fallthrough
CT: control target
= control target key end

     0   :  { %s5903_s0 = inlined_call_operand.vmem [shape: bf16[2,64,128], index: 0, kind: input, shape index: {}]   ;;  %s5904_s1 = inlined_call_operand.vmem [shape: f32[64,1152], index: 1, kind: input, shape index: {}]   ;;  %s5905_s2 = inlined_call_operand.vmem [shape: bf16[128,1152], index: 2, kind: input, shape index: {}]   ;;  %s5906_s3 = inlined_call_operand.vmem [shape: f32[1,1152], index: 3, kind: input, shape index: {}]   ;;  %s5907_s4 = inlined_call_operand.vmem [shape: bf16[1152,128], index: 4, kind: input, shape index: {}]   ;;  %s5908_s5 = inlined_call_operand.vmem [shape: f32[1,128], index: 5, kind: input, shape index: {}]   ;;  %s5909_s6 = inlined_call_operand.vmem [shape: bf16[128,128], index: 6, kind: input, shape index: {}]   ;;  %s5910_s7 = inlined_call_operand.vmem [shape: f32[1,128], index: 7, kind: input, shape index: {}]   ;;  %s5911_s8 = inlined_call_operand.hbm [shape: f32[1,2,128], index: 8, kind: output, shape index: {}]  }
   0x1   :  { %v2936_v0 = vld [vmem:[%s5905_s2 + $0x1f8] sm:$0xf]  ;;  %v3365_v1 = vld [vmem:[%s5905_s2 + $0x218] sm:$0xf0]  ;;  %v2938_v4 = vld [vmem:[%s5905_s2 + $0x21c] sm:$0xf0] }
   0x2   :  { %v3361_v2 = vld [vmem:[%s5905_s2 + $0x1fc] sm:$0xf]  ;;  %v2937_v3 = vor.u32 %v3365_v1, %v2936_v0  ;;  %v2944_v5 = vld [vmem:[%s5905_s2 + $0x200] sm:$0xf]  ;;  %v3366_v6 = vld [vmem:[%s5905_s2 + $0x220] sm:$0xf0] }
   0x3   :  { %v3577_v7 = vor.u32 %v3361_v2, %v2938_v4  ;;  %v3579_v8 = vor.u32 %v3366_v6, %v2944_v5  ;;  %v2900_v9 = vld [vmem:[%s5905_s2 + $0x1b0] sm:$0xf]  ;;  %v3356_v10 = vld [vmem:[%s5905_s2 + $0x1d0] sm:$0xf0]  ;;  %v2902_v13 = vld [vmem:[%s5905_s2 + $0x1d4] sm:$0xf0] }
   0x4   :  { %v3352_v11 = vld [vmem:[%s5905_s2 + $0x1b4] sm:$0xf]  ;;  %564 = vmatpush.bf16.msra.mxu0 %v2937_v3  ;;  %3450 = vmatpush.bf16.msra.mxu3 %v2937_v3  ;;  %v2901_v12 = vor.u32 %v3356_v10, %v2900_v9  ;;  %v2908_v14 = vld [vmem:[%s5905_s2 + $0x1b8] sm:$0xf]  ;;  %v3357_v15 = vld [vmem:[%s5905_s2 + $0x1d8] sm:$0xf0] }
   0x5   :  { %3458 = vmatpush.bf16.msra.mxu1 %v3577_v7  ;;  %3466 = vmatpush.bf16.msra.mxu2 %v3579_v8  ;;  %v3601_v16 = vor.u32 %v3352_v11, %v2902_v13  ;;  %v3603_v17 = vor.u32 %v3357_v15, %v2908_v14  ;;  %v2864_v18 = vld [vmem:[%s5905_s2 + $0x168] sm:$0xf]  ;;  %v3347_v19 = vld [vmem:[%s5905_s2 + $0x188] sm:$0xf0]  ;;  %v2866_v21 = vld [vmem:[%s5905_s2 + $0x18c] sm:$0xf0] }
   0x6   :  { %v3343_v20 = vld [vmem:[%s5905_s2 + $0x16c] sm:$0xf]  ;;  %v2872_v22 = vld [vmem:[%s5905_s2 + $0x170] sm:$0xf]  ;;  %v3348_v23 = vld [vmem:[%s5905_s2 + $0x190] sm:$0xf0]  ;;  %v2865_v24 = vor.u32 %v3347_v19, %v2864_v18 }
   0x7   :  { %v3625_v25 = vor.u32 %v3343_v20, %v2866_v21  ;;  %v3627_v26 = vor.u32 %v3348_v23, %v2872_v22  ;;  %v2828_v27 = vld [vmem:[%s5905_s2 + $0x120] sm:$0xf]  ;;  %v3338_v28 = vld [vmem:[%s5905_s2 + $0x140] sm:$0xf0]  ;;  %v2830_v30 = vld [vmem:[%s5905_s2 + $0x144] sm:$0xf0] }
   0x8   :  { %565 = vmatpush.bf16.msra.mxu0 %v2901_v12  ;;  %3451 = vmatpush.bf16.msra.mxu3 %v2901_v12  ;;  %v3334_v29 = vld [vmem:[%s5905_s2 + $0x124] sm:$0xf]  ;;  %v2836_v31 = vld [vmem:[%s5905_s2 + $0x128] sm:$0xf]  ;;  %v3339_v32 = vld [vmem:[%s5905_s2 + $0x148] sm:$0xf0]  ;;  %v2829_v33 = vor.u32 %v3338_v28, %v2828_v27 }
   0x9   :  { %3459 = vmatpush.bf16.msra.mxu1 %v3601_v16  ;;  %3467 = vmatpush.bf16.msra.mxu2 %v3603_v17  ;;  %v3649_v34 = vor.u32 %v3334_v29, %v2830_v30  ;;  %v3651_v35 = vor.u32 %v3339_v32, %v2836_v31  ;;  %v2792_v36 = vld [vmem:[%s5905_s2 + $0xd8] sm:$0xf]  ;;  %v3329_v37 = vld [vmem:[%s5905_s2 + $0xf8] sm:$0xf0]  ;;  %v2794_v39 = vld [vmem:[%s5905_s2 + $0xfc] sm:$0xf0] }
   0xa   :  { %v3325_v38 = vld [vmem:[%s5905_s2 + $0xdc] sm:$0xf]  ;;  %v2800_v40 = vld [vmem:[%s5905_s2 + $0xe0] sm:$0xf]  ;;  %v3330_v41 = vld [vmem:[%s5905_s2 + $0x100] sm:$0xf0]  ;;  %v2793_v42 = vor.u32 %v3329_v37, %v2792_v36 }
   0xb   :  { %v3673_v43 = vor.u32 %v3325_v38, %v2794_v39  ;;  %v3675_v44 = vor.u32 %v3330_v41, %v2800_v40  ;;  %v2756_v45 = vld [vmem:[%s5905_s2 + $0x90] sm:$0xf]  ;;  %v3320_v46 = vld [vmem:[%s5905_s2 + $0xb0] sm:$0xf0]  ;;  %v2758_v48 = vld [vmem:[%s5905_s2 + $0xb4] sm:$0xf0] }
   0xc   :  { %566 = vmatpush.bf16.msra.mxu0 %v2865_v24  ;;  %3452 = vmatpush.bf16.msra.mxu3 %v2865_v24  ;;  %v3316_v47 = vld [vmem:[%s5905_s2 + $0x94] sm:$0xf]  ;;  %v2764_v49 = vld [vmem:[%s5905_s2 + $0x98] sm:$0xf]  ;;  %v3321_v50 = vld [vmem:[%s5905_s2 + $0xb8] sm:$0xf0]  ;;  %v2757_v52 = vor.u32 %v3320_v46, %v2756_v45 }
   0xd   :  { %3460 = vmatpush.bf16.msra.mxu1 %v3625_v25  ;;  %3468 = vmatpush.bf16.msra.mxu2 %v3627_v26  ;;  %v2720_v51 = vld [vmem:[%s5905_s2 + $0x48] sm:$0xf]  ;;  %v3311_v53 = vld [vmem:[%s5905_s2 + $0x68] sm:$0xf0]  ;;  %v3703_v54 = vor.u32 %v3316_v47, %v2758_v48  ;;  %v3705_v55 = vor.u32 %v3321_v50, %v2764_v49 }
   0xe   :  { %v3307_v56 = vld [vmem:[%s5905_s2 + $0x4c] sm:$0xf] }
  0x10   :  { %567 = vmatpush.bf16.msra.mxu0 %v2829_v33  ;;  %3453 = vmatpush.bf16.msra.mxu3 %v2829_v33 }
  0x11   :  { %3461 = vmatpush.bf16.msra.mxu1 %v3649_v34  ;;  %3469 = vmatpush.bf16.msra.mxu2 %v3651_v35 }
  0x14   :  { %568 = vmatpush.bf16.msra.mxu0 %v2793_v42  ;;  %3454 = vmatpush.bf16.msra.mxu3 %v2793_v42 }
  0x15   :  { %3462 = vmatpush.bf16.msra.mxu1 %v3673_v43  ;;  %3470 = vmatpush.bf16.msra.mxu2 %v3675_v44 }
  0x16   :  { %13 = vsyncpa [#allocation3], 0  ;;  %v2722_v57 = vld [vmem:[%s5905_s2 + $0x6c] sm:$0xf0]  ;;  %v3312_v59 = vld [vmem:[%s5905_s2 + $0x70] sm:$0xf0]  ;;  %v2721_v60 = vor.u32 %v3311_v53, %v2720_v51 }
  0x17   :  { %v2728_v58 = vld [vmem:[%s5905_s2 + $0x50] sm:$0xf]  ;;  %v3721_v61 = vor.u32 %v3307_v56, %v2722_v57  ;;  %v2684_v63 = vld [vmem:[%s5905_s2] sm:$0xf]  ;;  %v3302_v0 = vld [vmem:[%s5905_s2 + $0x20] sm:$0xf0] }
  0x18   :  { %569 = vmatpush.bf16.msra.mxu0 %v2757_v52  ;;  %3455 = vmatpush.bf16.msra.mxu3 %v2757_v52  ;;  %v3723_v62 = vor.u32 %v3312_v59, %v2728_v58  ;;  %v3298_v1 = vld [vmem:[%s5905_s2 + $0x4] sm:$0xf]  ;;  %v2686_v2 = vld [vmem:[%s5905_s2 + $0x24] sm:$0xf0]  ;;  %v3303_v4 = vld [vmem:[%s5905_s2 + $0x28] sm:$0xf0]  ;;  %v2685_v9 = vor.u32 %v3302_v0, %v2684_v63 }
  0x19   :  { %3463 = vmatpush.bf16.msra.mxu1 %v3703_v54  ;;  %3471 = vmatpush.bf16.msra.mxu2 %v3705_v55  ;;  %v2692_v3 = vld [vmem:[%s5905_s2 + $0x8] sm:$0xf]  ;;  %v3362_v5 = vld [vmem:[%s5905_s2 + $0x204] sm:$0xf]  ;;  %v3751_v10 = vor.u32 %v3298_v1, %v2686_v2  ;;  %v3363_v14 = vld [vmem:[%s5905_s2 + $0x20c] sm:$0xf] }
  0x1a   :  { %v2946_v6 = vld [vmem:[%s5905_s2 + $0x224] sm:$0xf0]  ;;  %v3753_v11 = vor.u32 %v3303_v4, %v2692_v3  ;;  %v3758_v12 = vld [vmem:[%s5903_s0] sm:$0xff]  ;;  %v2954_v15 = vld [vmem:[%s5905_s2 + $0x22c] sm:$0xf0]  ;;  %s2641_s22 = sshll.u32 %s5911_s8, 4  ;;  %s2642_s22 = int_to_ptr.hbm [resolvable:$true] %s2641_s22 }
  0x1b   :  { %v2949_v13 = vor.u32 %v3362_v5, %v2946_v6  ;;  %v3769_v18 = vld [vmem:[%s5903_s0 + $0x10] sm:$0xff]  ;;  %v3353_v19 = vld [vmem:[%s5905_s2 + $0x1bc] sm:$0xf]  ;;  %v2910_v20 = vld [vmem:[%s5905_s2 + $0x1dc] sm:$0xf0]  ;;  %v2957_v21 = vor.u32 %v3363_v14, %v2954_v15  ;;  %vm2630_vm0 = vcmask 1041409  }
  0x1c   :  { %570 = vmatpush.bf16.msra.mxu0 %v2721_v60  ;;  %3456 = vmatpush.bf16.msra.mxu3 %v2721_v60  ;;  %v2913_v22 = vor.u32 %v3353_v19, %v2910_v20  ;;  %v3354_v23 = vld [vmem:[%s5905_s2 + $0x1c4] sm:$0xf]  ;;  %v2918_v24 = vld [vmem:[%s5905_s2 + $0x1e4] sm:$0xf0]  ;;  %v3344_v27 = vld [vmem:[%s5905_s2 + $0x174] sm:$0xf] }
  0x1d   :  { %3464 = vmatpush.bf16.msra.mxu1 %v3721_v61  ;;  %3472 = vmatpush.bf16.msra.mxu2 %v3723_v62  ;;  %v2921_v28 = vor.u32 %v3354_v23, %v2918_v24  ;;  %v3345_v30 = vld [vmem:[%s5905_s2 + $0x17c] sm:$0xf]  ;;  %v2882_v31 = vld [vmem:[%s5905_s2 + $0x19c] sm:$0xf0]  ;;  %v3335_v32 = vld [vmem:[%s5905_s2 + $0x12c] sm:$0xf] }
  0x1e   :  { %v2838_v33 = vld [vmem:[%s5905_s2 + $0x14c] sm:$0xf0]  ;;  %v3336_v37 = vld [vmem:[%s5905_s2 + $0x134] sm:$0xf]  ;;  %v2846_v38 = vld [vmem:[%s5905_s2 + $0x154] sm:$0xf0] }
  0x1f   :  { %v2841_v36 = vor.u32 %v3335_v32, %v2838_v33  ;;  %v2849_v39 = vor.u32 %v3336_v37, %v2846_v38  ;;  %v3820_v40 = vld [vmem:[%s5903_s0 + $0x8] sm:$0xff]  ;;  %v2810_v45 = vld [vmem:[%s5905_s2 + $0x10c] sm:$0xf0]  ;;  %v3317_v46 = vld [vmem:[%s5905_s2 + $0x9c] sm:$0xf] }
  0x20   :  { %571 = vmatpush.bf16.msra.mxu0 %v2685_v9  ;;  %3457 = vmatpush.bf16.msra.mxu3 %v2685_v9  ;;  %v2802_v41 = vld [vmem:[%s5905_s2 + $0x104] sm:$0xf0]  ;;  %v2766_v48 = vld [vmem:[%s5905_s2 + $0xbc] sm:$0xf0]  ;;  %v2960_v51 = vld [vmem:[%s5905_s2 + $0x210] sm:$0xf] }
  0x21   :  { %3465 = vmatpush.bf16.msra.mxu1 %v3751_v10  ;;  %3473 = vmatpush.bf16.msra.mxu2 %v3753_v11  ;;  %v2769_v49 = vor.u32 %v3317_v46, %v2766_v48  ;;  %v3856_v50 = vld [vmem:[%s5903_s0 + $0x20] sm:$0xff]  ;;  %v3368_v52 = vld [vmem:[%s5905_s2 + $0x230] sm:$0xf0]  ;;  %v2774_v57 = vld [vmem:[%s5905_s2 + $0xc4] sm:$0xf0] }
  0x22   :  { %v2961_v53 = vor.u32 %v3368_v52, %v2960_v51  ;;  %v3318_v56 = vld [vmem:[%s5905_s2 + $0xa4] sm:$0xf]  ;;  %v3308_v60 = vld [vmem:[%s5905_s2 + $0x54] sm:$0xf]  ;;  %v2888_v63 = vld [vmem:[%s5905_s2 + $0x180] sm:$0xf] }
  0x23   :  { %572 = vmatmul.bf16.vlgmr.msra.gmra.mxu0 %v3758_v12  ;;  %582 = vmatmul.bf16.vlgmr.msra.gmra.mxu3 %v3769_v18  ;;  %v2777_v59 = vor.u32 %v3318_v56, %v2774_v57  ;;  %v3350_v0 = vld [vmem:[%s5905_s2 + $0x1a0] sm:$0xf0]  ;;  %v2852_v2 = vld [vmem:[%s5905_s2 + $0x138] sm:$0xf]  ;;  %v3341_v3 = vld [vmem:[%s5905_s2 + $0x158] sm:$0xf0] }
  0x24   :  { %711 = vmatpush.bf16.msrb.mxu3 %v2949_v13  ;;  %613 = vmatpush.bf16.msrb.mxu0 %v3577_v7  ;;  %v2874_v7 = vld [vmem:[%s5905_s2 + $0x194] sm:$0xf0]  ;;  %v2889_v1 = vor.u32 %v3350_v0, %v2888_v63  ;;  %v2853_v4 = vor.u32 %v3341_v3, %v2852_v2  ;;  %v3905_v5 = vld [vmem:[%s5903_s0 + $0x28] sm:$0xff]  ;;  %v2738_v9 = vld [vmem:[%s5905_s2 + $0x7c] sm:$0xf0] }
  0x25   :  { %631 = vmatmul.bf16.vlgmr.msra.gmra.mxu1 %v3769_v18  ;;  %680 = vmatmul.bf16.vlgmr.msra.gmra.mxu2 %v3769_v18  ;;  %v2877_v29 = vor.u32 %v3344_v27, %v2874_v7  ;;  %v2694_v14 = vld [vmem:[%s5905_s2 + $0x2c] sm:$0xf0]  ;;  %v2952_v15 = vld [vmem:[%s5905_s2 + $0x208] sm:$0xf]  ;;  %v2744_v23 = vld [vmem:[%s5905_s2 + $0x60] sm:$0xf] }
  0x26   :  { %809 = vmatpush.bf16.msrb.mxu1 %v2957_v21  ;;  %858 = vmatpush.bf16.msrb.mxu2 %v2961_v53  ;;  %v2780_v20 = vld [vmem:[%s5905_s2 + $0xa8] sm:$0xf]  ;;  %v3323_v21 = vld [vmem:[%s5905_s2 + $0xc8] sm:$0xf0]  ;;  %v3314_v24 = vld [vmem:[%s5905_s2 + $0x80] sm:$0xf0] }
  0x27   :  { %v2916_v7 = vld [vmem:[%s5905_s2 + $0x1c0] sm:$0xf]  ;;  %v2708_v32 = vld [vmem:[%s5905_s2 + $0x18] sm:$0xf]  ;;  %v3305_v33 = vld [vmem:[%s5905_s2 + $0x38] sm:$0xf0] }
  0x28   :  { %614 = vmatpush.bf16.msrb.mxu0 %v3601_v16  ;;  %712 = vmatpush.bf16.msrb.mxu3 %v2913_v22  ;;  %v2885_v16 = vor.u32 %v3345_v30, %v2882_v31  ;;  %v2781_v22 = vor.u32 %v3323_v21, %v2780_v20  ;;  %v2702_v30 = vld [vmem:[%s5905_s2 + $0x34] sm:$0xf0]  ;;  %v3358_v31 = vld [vmem:[%s5905_s2 + $0x1e0] sm:$0xf0]  ;;  %v3972_v37 = vld [vmem:[%s5903_s0 + $0x30] sm:$0xff] }
  0x29   :  { %v2880_v38 = vld [vmem:[%s5905_s2 + $0x178] sm:$0xf]  ;;  %v2808_v48 = vld [vmem:[%s5905_s2 + $0xe8] sm:$0xf]  ;;  %v2772_v52 = vld [vmem:[%s5905_s2 + $0xa0] sm:$0xf] }
  0x2a   :  { %810 = vmatpush.bf16.msrb.mxu1 %v2921_v28  ;;  %v2745_v28 = vor.u32 %v3314_v24, %v2744_v23  ;;  %v3377_v46 = vld [vmem:[%s5907_s4 + $0x38] sm:$0xff]  ;;  %v3322_v53 = vld [vmem:[%s5905_s2 + $0xc0] sm:$0xf0]  ;;  %v3355_v63 = vld [vmem:[%s5905_s2 + $0x1cc] sm:$0xf] }
  0x2b   :  { %v2736_v56 = vld [vmem:[%s5905_s2 + $0x58] sm:$0xf]  ;;  %v3313_v57 = vld [vmem:[%s5905_s2 + $0x78] sm:$0xf0]  ;;  %v2926_v0 = vld [vmem:[%s5905_s2 + $0x1ec] sm:$0xf0] }
  0x2c   :  { %615 = vmatpush.bf16.msrb.mxu0 %v3625_v25  ;;  %713 = vmatpush.bf16.msrb.mxu3 %v2877_v29  ;;  %v3825_v25 = vld [vmem:[%s5903_s0 + $0x18] sm:$0xff]  ;;  %v3300_v29 = vld [vmem:[%s5905_s2 + $0x14] sm:$0xf]  ;;  %v2854_v20 = vld [vmem:[%s5905_s2 + $0x15c] sm:$0xf0] }
  0x2d   :  { %v3376_v2 = vld [vmem:[%s5907_s4 + $0x30] sm:$0xff]  ;;  %v3374_v23 = vld [vmem:[%s5907_s4 + $0x20] sm:$0xff] }
  0x2e   :  { %811 = vmatpush.bf16.msrb.mxu1 %v2885_v16  ;;  %v2917_v16 = vor.u32 %v3358_v31, %v2916_v7 }
  0x30   :  { %616 = vmatpush.bf16.msrb.mxu0 %v3649_v34  ;;  %714 = vmatpush.bf16.msrb.mxu3 %v2841_v36  ;;  %v3326_v34 = vld [vmem:[%s5905_s2 + $0xe4] sm:$0xf]  ;;  %v2709_v36 = vor.u32 %v3305_v33, %v2708_v32  ;;  %v3328_v32 = vld [vmem:[%s5905_s2 + $0xf4] sm:$0xf]  ;;  %v2818_v33 = vld [vmem:[%s5905_s2 + $0x114] sm:$0xf0] }
  0x31   :  { %v2805_v42 = vor.u32 %v3326_v34, %v2802_v41  ;;  %v2844_v34 = vld [vmem:[%s5905_s2 + $0x130] sm:$0xf]  ;;  %v3340_v41 = vld [vmem:[%s5905_s2 + $0x150] sm:$0xf0] }
  0x32   :  { %812 = vmatpush.bf16.msrb.mxu1 %v2849_v39  ;;  %v3349_v39 = vld [vmem:[%s5905_s2 + $0x198] sm:$0xf0] }
  0x33   :  { %577 = vmatmul.bf16.gmra.mxu0 %v3820_v40  ;;  %587 = vmatmul.bf16.gmra.mxu3 %v3825_v25 }
  0x34   :  { %617 = vmatpush.bf16.msrb.mxu0 %v3673_v43  ;;  %715 = vmatpush.bf16.msrb.mxu3 %v2805_v42  ;;  %v3327_v43 = vld [vmem:[%s5905_s2 + $0xec] sm:$0xf]  ;;  %v3364_v42 = vld [vmem:[%s5905_s2 + $0x214] sm:$0xf] }
  0x35   :  { %636 = vmatmul.bf16.gmra.mxu1 %v3825_v25  ;;  %685 = vmatmul.bf16.gmra.mxu2 %v3825_v25  ;;  %v2813_v47 = vor.u32 %v3327_v43, %v2810_v45  ;;  %v2962_v43 = vld [vmem:[%s5905_s2 + $0x234] sm:$0xf0] }
  0x36   :  { %v2965_v45 = vor.u32 %v3364_v42, %v2962_v43  ;;  %v4130_v43 = vld [vmem:[%s5904_s1 + $0x48] sm:$0xff] }
  0x37   :  { %813 = vmatpush.bf16.msrb.mxu1 %v2813_v47  ;;  %v2845_v47 = vor.u32 %v3340_v41, %v2844_v34  ;;  %v4124_v34 = vld [vmem:[%s5904_s1 + $0x128] sm:$0xff] }
  0x38   :  { %618 = vmatpush.bf16.msrb.mxu0 %v3703_v54  ;;  %716 = vmatpush.bf16.msrb.mxu3 %v2769_v49  ;;  %v3359_v54 = vld [vmem:[%s5905_s2 + $0x1e8] sm:$0xf0] }
  0x39   :  { %v3331_v49 = vld [vmem:[%s5905_s2 + $0x108] sm:$0xf0] }
  0x3a   :  { %v2809_v51 = vor.u32 %v3331_v49, %v2808_v48  ;;  %v4140_v49 = vld [vmem:[%s5904_s1 + $0x170] sm:$0xff] }
  0x3b   :  { %814 = vmatpush.bf16.msrb.mxu1 %v2777_v59  ;;  %v2700_v59 = vld [vmem:[%s5905_s2 + $0x10] sm:$0xf] }
  0x3c   :  { %619 = vmatpush.bf16.msrb.mxu0 %v3721_v61 }
  0x40   :  { %620 = vmatpush.bf16.msrb.mxu0 %v3751_v10  ;;  %v3299_v10 = vld [vmem:[%s5905_s2 + $0xc] sm:$0xf] }
  0x41   :  { %v2697_v19 = vor.u32 %v3299_v10, %v2694_v14  ;;  %v3351_v14 = vld [vmem:[%s5905_s2 + $0x1a8] sm:$0xf0] }
  0x43   :  { %592 = vmatmul.bf16.gmra.mxu3 %v3856_v50  ;;  %621 = vmatmul.bf16.vlgmr.msrb.gmra.mxu0 %v3758_v12 }
  0x44   :  { %662 = vmatpush.bf16.msra.mxu0 %v3579_v8  ;;  %v2924_v8 = vld [vmem:[%s5905_s2 + $0x1c8] sm:$0xf] }
  0x45   :  { %641 = vmatmul.bf16.gmra.mxu1 %v3856_v50  ;;  %690 = vmatmul.bf16.gmra.mxu2 %v3856_v50  ;;  %v2925_v58 = vor.u32 %v3359_v54, %v2924_v8  ;;  %v2773_v8 = vor.u32 %v3322_v53, %v2772_v52  ;;  %v4014_v54 = vld [vmem:[%s5903_s0 + $0x38] sm:$0xff] }
  0x47   :  { %859 = vmatpush.bf16.msrb.mxu2 %v2925_v58  ;;  %v2737_v58 = vor.u32 %v3313_v57, %v2736_v56 }
  0x48   :  { %663 = vmatpush.bf16.msra.mxu0 %v3603_v17  ;;  %v2730_v17 = vld [vmem:[%s5905_s2 + $0x74] sm:$0xf0] }
  0x49   :  { %v2733_v61 = vor.u32 %v3308_v60, %v2730_v17  ;;  %v3304_v60 = vld [vmem:[%s5905_s2 + $0x30] sm:$0xf0]  ;;  %v2968_v17 = vld [vmem:[%s5905_s2 + $0x218] sm:$0xf] }
  0x4a   :  { %v2701_v3 = vor.u32 %v3304_v60, %v2700_v59 }
  0x4b   :  { %717 = vmatpush.bf16.msrb.mxu3 %v2733_v61  ;;  %860 = vmatpush.bf16.msrb.mxu2 %v2889_v1  ;;  %v3369_v61 = vld [vmem:[%s5905_s2 + $0x238] sm:$0xf0]  ;;  %v2929_v1 = vor.u32 %v3355_v63, %v2926_v0  ;;  %v4168_v0 = vld [vmem:[%s5904_s1 + $0x120] sm:$0xff] }
  0x4c   :  { %664 = vmatpush.bf16.msra.mxu0 %v3627_v26  ;;  %v2816_v26 = vld [vmem:[%s5905_s2 + $0xf0] sm:$0xf]  ;;  %v3373_v63 = vld [vmem:[%s5907_s4 + $0x18] sm:$0xff] }
  0x4f   :  { %861 = vmatpush.bf16.msrb.mxu2 %v2853_v4  ;;  %718 = vmatpush.bf16.msrb.mxu3 %v2697_v19  ;;  %v2969_v4 = vor.u32 %v3369_v61, %v2968_v17  ;;  %v3337_v19 = vld [vmem:[%s5905_s2 + $0x13c] sm:$0xf]  ;;  %v2824_v17 = vld [vmem:[%s5905_s2 + $0xf8] sm:$0xf] }
  0x50   :  { %665 = vmatpush.bf16.msra.mxu0 %v3651_v35  ;;  %v3332_v35 = vld [vmem:[%s5905_s2 + $0x110] sm:$0xf0]  ;;  %v2857_v21 = vor.u32 %v3337_v19, %v2854_v20  ;;  %v3333_v61 = vld [vmem:[%s5905_s2 + $0x118] sm:$0xf0] }
  0x51   :  { %v2817_v6 = vor.u32 %v3332_v35, %v2816_v26  ;;  %v2932_v26 = vld [vmem:[%s5905_s2 + $0x1d0] sm:$0xf]  ;;  %v3360_v35 = vld [vmem:[%s5905_s2 + $0x1f0] sm:$0xf0] }
  0x53   :  { %597 = vmatmul.bf16.gmra.mxu3 %v3905_v5  ;;  %626 = vmatmul.bf16.gmra.mxu0 %v3820_v40 }
  0x54   :  { %666 = vmatpush.bf16.msra.mxu0 %v3675_v44  ;;  %v3309_v44 = vld [vmem:[%s5905_s2 + $0x5c] sm:$0xf]  ;;  %862 = vmatpush.bf16.msrb.mxu2 %v2817_v6  ;;  %v2933_v6 = vor.u32 %v3360_v35, %v2932_v26 }
  0x55   :  { %646 = vmatmul.bf16.gmra.mxu1 %v3905_v5  ;;  %695 = vmatmul.bf16.gmra.mxu2 %v3905_v5  ;;  %v2741_v13 = vor.u32 %v3309_v44, %v2738_v9  ;;  %v3346_v44 = vld [vmem:[%s5905_s2 + $0x184] sm:$0xf]  ;;  %v2890_v9 = vld [vmem:[%s5905_s2 + $0x1a4] sm:$0xf0] }
  0x56   :  { %907 = vmatpush.bf16.msra.mxu3 %v2965_v45  ;;  %v2893_v10 = vor.u32 %v3346_v44, %v2890_v9 }
  0x57   :  { %815 = vmatpush.bf16.msrb.mxu1 %v2741_v13  ;;  %v2896_v13 = vld [vmem:[%s5905_s2 + $0x188] sm:$0xf] }
  0x58   :  { %667 = vmatpush.bf16.msra.mxu0 %v3705_v55  ;;  %v3367_v55 = vld [vmem:[%s5905_s2 + $0x228] sm:$0xf0]  ;;  %863 = vmatpush.bf16.msrb.mxu2 %v2781_v22  ;;  %v2860_v22 = vld [vmem:[%s5905_s2 + $0x140] sm:$0xf] }
  0x59   :  { %v2953_v27 = vor.u32 %v3367_v55, %v2952_v15  ;;  %v2897_v15 = vor.u32 %v3351_v14, %v2896_v13  ;;  %v4085_v55 = vld [vmem:[%s5906_s3] sm:$0xff] }
  0x5a   :  { %908 = vmatpush.bf16.msra.mxu3 %v2929_v1  ;;  %v4097_v7 = vperm.slane %v4085_v55, 1  ;;  %v4173_v1 = vld [vmem:[%s5904_s1 + $0x168] sm:$0xff] }
  0x5c   :  { %668 = vmatpush.bf16.msra.mxu0 %v3723_v62  ;;  %v2705_v62 = vor.u32 %v3300_v29, %v2702_v30  ;;  %864 = vmatpush.bf16.msrb.mxu2 %v2745_v28  ;;  %v4100_v28 = vperm.slane %v4085_v55, 0 }
  0x5e   :  { %816 = vmatpush.bf16.msrb.mxu1 %v2705_v62  ;;  %909 = vmatpush.bf16.msra.mxu3 %v2893_v10 }
  0x60   :  { %669 = vmatpush.bf16.msra.mxu0 %v3753_v11  ;;  %v2881_v11 = vor.u32 %v3349_v39, %v2880_v38  ;;  %865 = vmatpush.bf16.msrb.mxu2 %v2709_v36  ;;  %v2821_v38 = vor.u32 %v3328_v32, %v2818_v33  ;;  %v4119_v39 = vld [vmem:[%s5904_s1] sm:$0xff] }
  0x61   :  { %v4223_v33 = vld [vmem:[%s5904_s1 + $0x200] sm:$0xff] }
  0x62   :  { %2017 = vmatpush.bf16.msra.mxu1 %v3377_v46  ;;  %910 = vmatpush.bf16.msra.mxu3 %v2857_v21 }
  0x63   :  { %602 = vmatmul.bf16.gmra.mxu3 %v3972_v37  ;;  %670 = vmatmul.bf16.vlgmr.msra.gmra.mxu0 %v3758_v12 }
  0x64   :  { %760 = vmatpush.bf16.msrb.mxu0 %v2953_v27 }
  0x65   :  { %651 = vmatmul.bf16.gmra.mxu1 %v3972_v37  ;;  %700 = vmatmul.bf16.gmra.mxu2 %v3972_v37 }
  0x66   :  { %2018 = vmatpush.bf16.msra.mxu1 %v3376_v2  ;;  %911 = vmatpush.bf16.msra.mxu3 %v2821_v38 }
  0x68   :  { %761 = vmatpush.bf16.msrb.mxu0 %v2917_v16 }
  0x6c   :  { %762 = vmatpush.bf16.msrb.mxu0 %v2881_v11 }
  0x70   :  { %763 = vmatpush.bf16.msrb.mxu0 %v2845_v47 }
  0x73   :  { %607 = vmatmul.bf16.gmra.mxu3 %v4014_v54  ;;  %675 = vmatmul.bf16.gmra.mxu0 %v3820_v40 }
  0x74   :  { %764 = vmatpush.bf16.msrb.mxu0 %v2809_v51 }
  0x75   :  { %656 = vmatmul.bf16.gmra.mxu1 %v4014_v54  ;;  %705 = vmatmul.bf16.gmra.mxu2 %v4014_v54 }
  0x78   :  { %765 = vmatpush.bf16.msrb.mxu0 %v2773_v8 }
  0x7c   :  { %766 = vmatpush.bf16.msrb.mxu0 %v2737_v58 }
  0x80   :  { %767 = vmatpush.bf16.msrb.mxu0 %v2701_v3  ;;  %v2825_v3 = vor.u32 %v3333_v61, %v2824_v17  ;;  %v4251_v17 = vld [vmem:[%s5904_s1 + $0x1b0] sm:$0xff]  ;;  %v4256_v61 = vld [vmem:[%s5904_s1 + $0x1f8] sm:$0xff] }
  0x83   :  { %719 = vmatmul.bf16.vlgmr.msrb.gmra.mxu3 %v3758_v12  ;;  %768 = vmatmul.bf16.vlgmr.msrb.gmra.mxu0 %v3758_v12 }
  0x84   :  { %956 = vmatpush.bf16.msra.mxu0 %v2969_v4 }
  0x85   :  { %817 = vmatmul.bf16.vlgmr.msrb.gmra.mxu1 %v3758_v12  ;;  %866 = vmatmul.bf16.vlgmr.msrb.gmra.mxu2 %v3758_v12  ;;  %v3375_v12 = vld [vmem:[%s5907_s4 + $0x28] sm:$0xff] }
  0x86   :  { %2019 = vmatpush.bf16.msra.mxu1 %v3375_v12  ;;  %v2782_v12 = vld [vmem:[%s5905_s2 + $0xcc] sm:$0xf0] }
  0x88   :  { %957 = vmatpush.bf16.msra.mxu0 %v2933_v6 }
  0x8a   :  { %2020 = vmatpush.bf16.msra.mxu1 %v3374_v23  ;;  %v4207_v23 = vld [vmem:[%s5904_s1 + $0x1b8] sm:$0xff] }
  0x8c   :  { %958 = vmatpush.bf16.msra.mxu0 %v2897_v15  ;;  %v3319_v15 = vld [vmem:[%s5905_s2 + $0xac] sm:$0xf] }
  0x8d   :  { %v2785_v21 = vor.u32 %v3319_v15, %v2782_v12  ;;  %v4279_v12 = vld [vmem:[%s5904_s1 + $0x8] sm:$0xff] }
  0x8e   :  { %2021 = vmatpush.bf16.msra.mxu1 %v3373_v63 }
  0x8f   :  { %912 = vmatpush.bf16.msra.mxu3 %v2785_v21  ;;  %v4284_v21 = vperm.slane %v4085_v55, 2 }
  0x93   :  { %724 = vmatmul.bf16.gmra.mxu3 %v3820_v40  ;;  %773 = vmatmul.bf16.gmra.mxu0 %v3820_v40 }
  0x95   :  { %822 = vmatmul.bf16.gmra.mxu1 %v3820_v40  ;;  %871 = vmatmul.bf16.gmra.mxu2 %v3820_v40  ;;  %v3342_v40 = vld [vmem:[%s5905_s2 + $0x160] sm:$0xf0] }
  0x96   :  { %v2861_v24 = vor.u32 %v3342_v40, %v2860_v22 }
  0x98   :  { %959 = vmatpush.bf16.msra.mxu0 %v2861_v24 }
  0x9c   :  { %960 = vmatpush.bf16.msra.mxu0 %v2825_v3 }
  0xa0   :  { %v573_v27 = vpop.f32.mrf.mxu0 }
  0xa1   :  { %v574_v30 = vadd.f32 %v573_v27, %v4100_v28 }
  0xa2   :  { %v632_v29 = vpop.f32.mrf.mxu1 }
  0xa3   :  { %729 = vmatmul.bf16.gmra.mxu3 %v3769_v18  ;;  %778 = vmatmul.bf16.gmra.mxu0 %v3769_v18  ;;  %v633_v31 = vadd.f32 %v632_v29, %v4097_v7  ;;  %v1005_v16 = vmax.f32 %v574_v30, 0.0  ;;  %v4213_v29 = vld [vmem:[%s5904_s1 + $0xd8] sm:$0xff] }
  0xa5   :  { %827 = vmatmul.bf16.gmra.mxu1 %v3769_v18  ;;  %876 = vmatmul.bf16.gmra.mxu2 %v3769_v18  ;;  %v1042_v11 = vmax.f32 %v633_v31, 0.0  ;;  %v4134_v46 = vmul.f32 %v4119_v39, %v1005_v16 }
  0xa6   :  { %v583_v62 = vpop.f32.mrf.mxu3 }
  0xa7   :  { %v584_v47 = vadd.f32 %v583_v62, %v4100_v28  ;;  %v4143_v51 = vmul.f32 %v4124_v34, %v1042_v11 }
  0xa8   :  { %v4114_v36 = vpop.f32.mrf.mxu2  ;;  %v575_v18 = vpop.f32.mrf.mxu0 }
  0xa9   :  { %v576_v41 = vadd.f32 %v575_v18, %v4100_v28  ;;  %v1041_v57 = vmax.f32 %v584_v47, 0.0  ;;  %v3372_v47 = vld [vmem:[%s5907_s4 + $0x10] sm:$0xff] }
  0xaa   :  { %v634_v42 = vpop.f32.mrf.mxu1  ;;  %2022 = vmatpush.bf16.msra.mxu1 %v3372_v47 }
  0xab   :  { %v635_v45 = vadd.f32 %v634_v42, %v4097_v7  ;;  %v1014_v48 = vmax.f32 %v576_v41, 0.0  ;;  %v4178_v6 = vmul.f32 %v4168_v0, %v1041_v57  ;;  %v2788_v42 = vld [vmem:[%s5905_s2 + $0xb0] sm:$0xf] }
  0xad   :  { %v1051_v52 = vmax.f32 %v635_v45, 0.0  ;;  %v4146_v53 = vmul.f32 %v4130_v43, %v1014_v48  ;;  %v3324_v45 = vld [vmem:[%s5905_s2 + $0xd0] sm:$0xf0] }
  0xae   :  { %v585_v56 = vpop.f32.mrf.mxu3  ;;  %v2789_v57 = vor.u32 %v3324_v45, %v2788_v42 }
  0xaf   :  { %v4149_v8 = vmul.f32 %v4140_v49, %v1051_v52  ;;  %v586_v59 = vadd.f32 %v585_v56, %v4100_v28 }
  0xb0   :  { %v4154_v60 = vpop.f32.mrf.mxu2  ;;  %v578_v2 = vpop.f32.mrf.mxu0  ;;  %961 = vmatpush.bf16.msra.mxu0 %v2789_v57  ;;  %v4309_v57 = vld [vmem:[%s5904_s1 + $0x10] sm:$0xff] }
  0xb1   :  { %v1050_v26 = vmax.f32 %v586_v59, 0.0  ;;  %v579_v9 = vadd.f32 %v578_v2, %v4100_v28 }
  0xb2   :  { %v637_v35 = vpop.f32.mrf.mxu1 }
  0xb3   :  { %v4181_v44 = vmul.f32 %v4173_v1, %v1050_v26  ;;  %734 = vmatmul.bf16.gmra.mxu3 %v3825_v25  ;;  %783 = vmatmul.bf16.gmra.mxu0 %v3825_v25  ;;  %v638_v10 = vadd.f32 %v637_v35, %v4097_v7  ;;  %v1023_v19 = vmax.f32 %v579_v9, 0.0 }
  0xb5   :  { %832 = vmatmul.bf16.gmra.mxu1 %v3825_v25  ;;  %881 = vmatmul.bf16.gmra.mxu2 %v3825_v25  ;;  %v4202_v25 = vld [vmem:[%s5904_s1 + $0x90] sm:$0xff]  ;;  %v1060_v22 = vmax.f32 %v638_v10, 0.0 }
  0xb6   :  { %v588_v14 = vpop.f32.mrf.mxu3  ;;  %v4217_v31 = vmul.f32 %v4202_v25, %v1023_v19 }
  0xb7   :  { %v589_v62 = vadd.f32 %v588_v14, %v4100_v28  ;;  %v4226_v16 = vmul.f32 %v4207_v23, %v1060_v22  ;;  %v3385_v14 = vld [vmem:[%s5907_s4 + $0x78] sm:$0xff] }
  0xb8   :  { %v4197_v20 = vpop.f32.mrf.mxu2  ;;  %v580_v40 = vpop.f32.mrf.mxu0  ;;  %2066 = vmatpush.bf16.msra.mxu2 %v3385_v14  ;;  %v4320_v14 = vld [vmem:[%s5904_s1 + $0x50] sm:$0xff] }
  0xb9   :  { %v581_v24 = vadd.f32 %v580_v40, %v4100_v28  ;;  %v1059_v48 = vmax.f32 %v589_v62, 0.0 }
  0xba   :  { %v639_v27 = vpop.f32.mrf.mxu1 }
  0xbb   :  { %v640_v30 = vadd.f32 %v639_v27, %v4097_v7  ;;  %v1032_v32 = vmax.f32 %v581_v24, 0.0  ;;  %v4264_v9 = vmul.f32 %v4251_v17, %v1059_v48  ;;  %v2746_v24 = vld [vmem:[%s5905_s2 + $0x84] sm:$0xf0] }
  0xbd   :  { %v1069_v38 = vmax.f32 %v640_v30, 0.0  ;;  %v4229_v11 = vmul.f32 %v4213_v29, %v1032_v32  ;;  %v3384_v32 = vld [vmem:[%s5907_s4 + $0x70] sm:$0xff] }
  0xbe   :  { %v590_v41 = vpop.f32.mrf.mxu3  ;;  %2067 = vmatpush.bf16.msra.mxu2 %v3384_v32 }
  0xbf   :  { %v4232_v18 = vmul.f32 %v4223_v33, %v1069_v38  ;;  %v591_v52 = vadd.f32 %v590_v41, %v4100_v28 }
  0xc0   :  { %v4244_v56 = vpop.f32.mrf.mxu2  ;;  %v4258_v63 = vpop.f32.mrf.mxu0 }
  0xc1   :  { %v1068_v3 = vmax.f32 %v591_v52, 0.0 }
  0xc2   :  { %v642_v26 = vpop.f32.mrf.mxu1 }
  0xc3   :  { %v643_v35 = vadd.f32 %v642_v26, %v4097_v7  ;;  %v4267_v10 = vmul.f32 %v4256_v61, %v1068_v3  ;;  %739 = vmatmul.bf16.gmra.mxu3 %v3856_v50  ;;  %788 = vmatmul.bf16.gmra.mxu0 %v3856_v50  ;;  %v3383_v3 = vld [vmem:[%s5907_s4 + $0x68] sm:$0xff] }
  0xc4   :  { %2068 = vmatpush.bf16.msra.mxu2 %v3383_v3 }
  0xc5   :  { %v1078_v15 = vmax.f32 %v643_v35, 0.0  ;;  %837 = vmatmul.bf16.gmra.mxu1 %v3856_v50  ;;  %886 = vmatmul.bf16.gmra.mxu2 %v3856_v50  ;;  %v3310_v50 = vld [vmem:[%s5905_s2 + $0x64] sm:$0xf] }
  0xc6   :  { %v593_v40 = vpop.f32.mrf.mxu3  ;;  %v2749_v62 = vor.u32 %v3310_v50, %v2746_v24  ;;  %v2752_v24 = vld [vmem:[%s5905_s2 + $0x68] sm:$0xf] }
  0xc7   :  { %v4287_v22 = vmul.f32 %v4279_v12, %v1078_v15  ;;  %v594_v27 = vadd.f32 %v593_v40, %v4100_v28 }
  0xc8   :  { %v691_v30 = vpop.f32.mrf.mxu2  ;;  %v4300_v41 = vpop.f32.mrf.mxu0  ;;  %913 = vmatpush.bf16.msra.mxu3 %v2749_v62 }
  0xc9   :  { %5979 = vst [vmem:[#allocation5_spill] sm:$0xff] %v4287_v22  ;;  %v692_v38 = vadd.f32 %v691_v30, %v4284_v21  ;;  %v1077_v42 = vmax.f32 %v594_v27, 0.0  ;;  %v3315_v27 = vld [vmem:[%s5905_s2 + $0x88] sm:$0xf0] }
  0xca   :  { %v644_v45 = vpop.f32.mrf.mxu1  ;;  %v3371_v30 = vld [vmem:[%s5907_s4 + $0x8] sm:$0xff] }
  0xcb   :  { %v1079_v47 = vmax.f32 %v692_v38, 0.0  ;;  %v645_v48 = vadd.f32 %v644_v45, %v4097_v7  ;;  %v4304_v52 = vmul.f32 %v4119_v39, %v1077_v42  ;;  %v2753_v38 = vor.u32 %v3315_v27, %v2752_v24  ;;  %v3382_v42 = vld [vmem:[%s5907_s4 + $0x60] sm:$0xff]  ;;  %2023 = vmatpush.bf16.msra.mxu1 %v3371_v30 }
  0xcc   :  { %2069 = vmatpush.bf16.msra.mxu2 %v3382_v42  ;;  %v3301_v42 = vld [vmem:[%s5905_s2 + $0x1c] sm:$0xf] }
  0xcd   :  { %5980 = vst [vmem:[#allocation6_spill] sm:$0xff] %v4304_v52  ;;  %v4315_v26 = vmul.f32 %v4309_v57, %v1079_v47  ;;  %v1087_v35 = vmax.f32 %v645_v48, 0.0  ;;  %962 = vmatpush.bf16.msra.mxu0 %v2753_v38 }
  0xce   :  { %v595_v15 = vpop.f32.mrf.mxu3 }
  0xcf   :  { %5981 = vst [vmem:[#allocation7_spill] sm:$0xff] %v4315_v26  ;;  %v4323_v39 = vmul.f32 %v4320_v14, %v1087_v35  ;;  %v596_v40 = vadd.f32 %v595_v15, %v4100_v28 }
  0xd0   :  { %v693_v50 = vpop.f32.mrf.mxu2  ;;  %v4336_v32 = vpop.f32.mrf.mxu0 }
  0xd1   :  { %5982 = vst [vmem:[#allocation8_spill] sm:$0xff] %v4323_v39  ;;  %v694_v62 = vadd.f32 %v693_v50, %v4284_v21  ;;  %v1086_v47 = vmax.f32 %v596_v40, 0.0  ;;  %v4350_v50 = vld [vmem:[%s5904_s1 + $0x58] sm:$0xff] }
  0xd2   :  { %v647_v48 = vpop.f32.mrf.mxu1  ;;  %v3381_v40 = vld [vmem:[%s5907_s4 + $0x58] sm:$0xff] }
  0xd3   :  { %v1088_v3 = vmax.f32 %v694_v62, 0.0  ;;  %v648_v35 = vadd.f32 %v647_v48, %v4097_v7  ;;  %v4345_v15 = vmul.f32 %v4130_v43, %v1086_v47  ;;  %744 = vmatmul.bf16.gmra.mxu3 %v3905_v5  ;;  %793 = vmatmul.bf16.gmra.mxu0 %v3905_v5  ;;  %v4365_v43 = vld [vmem:[%s5904_s1 + $0x98] sm:$0xff] }
  0xd4   :  { %2070 = vmatpush.bf16.msra.mxu2 %v3381_v40 }
  0xd5   :  { %v4358_v24 = vmul.f32 %v4350_v50, %v1088_v3  ;;  %v1096_v27 = vmax.f32 %v648_v35, 0.0  ;;  %842 = vmatmul.bf16.gmra.mxu1 %v3905_v5  ;;  %891 = vmatmul.bf16.gmra.mxu2 %v3905_v5  ;;  %v2710_v5 = vld [vmem:[%s5905_s2 + $0x3c] sm:$0xf0]  ;;  %v3380_v35 = vld [vmem:[%s5907_s4 + $0x50] sm:$0xff] }
  0xd6   :  { %v598_v38 = vpop.f32.mrf.mxu3  ;;  %v2713_v3 = vor.u32 %v3301_v42, %v2710_v5  ;;  %v3379_v42 = vld [vmem:[%s5907_s4 + $0x48] sm:$0xff] }
  0xd7   :  { %5983 = vst [vmem:[#allocation9_spill] sm:$0xff] %v4358_v24  ;;  %v4370_v62 = vmul.f32 %v4365_v43, %v1096_v27  ;;  %v599_v47 = vadd.f32 %v598_v38, %v4100_v28  ;;  %v4392_v38 = vld [vmem:[%s5904_s1 + $0xa0] sm:$0xff] }
  0xd8   :  { %v696_v48 = vpop.f32.mrf.mxu2  ;;  %v4383_v45 = vpop.f32.mrf.mxu0  ;;  %914 = vmatpush.bf16.msra.mxu3 %v2713_v3  ;;  %2071 = vmatpush.bf16.msra.mxu2 %v3380_v35  ;;  %v3306_v3 = vld [vmem:[%s5905_s2 + $0x40] sm:$0xf0] }
  0xd9   :  { %5984 = vst [vmem:[#allocation10_spill] sm:$0xff] %v4370_v62  ;;  %v697_v27 = vadd.f32 %v696_v48, %v4284_v21  ;;  %v1095_v30 = vmax.f32 %v599_v47, 0.0  ;;  %v2716_v48 = vld [vmem:[%s5905_s2 + $0x20] sm:$0xf] }
  0xda   :  { %v649_v2 = vpop.f32.mrf.mxu1 }
  0xdb   :  { %v1097_v19 = vmax.f32 %v697_v27, 0.0  ;;  %v650_v4 = vadd.f32 %v649_v2, %v4097_v7  ;;  %v4387_v40 = vmul.f32 %v4202_v25, %v1095_v30  ;;  %v4403_v2 = vld [vmem:[%s5904_s1 + $0xe0] sm:$0xff]  ;;  %v2717_v27 = vor.u32 %v3306_v3, %v2716_v48  ;;  %v4431_v48 = vld [vmem:[%s5904_s1 + $0xe8] sm:$0xff] }
  0xdc   :  { %2072 = vmatpush.bf16.msra.mxu2 %v3379_v42 }
  0xdd   :  { %v4398_v5 = vmul.f32 %v4392_v38, %v1097_v19  ;;  %v1105_v47 = vmax.f32 %v650_v4, 0.0  ;;  %v3370_v4 = vld [vmem:[%s5907_s4] sm:$0xff]  ;;  %963 = vmatpush.bf16.msra.mxu0 %v2717_v27 }
  0xde   :  { %v600_v30 = vpop.f32.mrf.mxu3  ;;  %2024 = vmatpush.bf16.msra.mxu1 %v3370_v4 }
  0xdf   :  { %5985 = vst [vmem:[#allocation11_spill] sm:$0xff] %v4398_v5  ;;  %v4406_v25 = vmul.f32 %v4403_v2, %v1105_v47  ;;  %v601_v19 = vadd.f32 %v600_v30, %v4100_v28  ;;  %v3378_v47 = vld [vmem:[%s5907_s4 + $0x40] sm:$0xff] }
  0xe0   :  { %v698_v35 = vpop.f32.mrf.mxu2  ;;  %v671_v59 = vpop.f32.mrf.mxu0  ;;  %2073 = vmatpush.bf16.msra.mxu2 %v3378_v47 }
  0xe1   :  { %v699_v13 = vadd.f32 %v698_v35, %v4284_v21  ;;  %v1104_v42 = vmax.f32 %v601_v19, 0.0  ;;  %v672_v3 = vadd.f32 %v671_v59, %v4284_v21  ;;  %v3393_v59 = vld [vmem:[%s5907_s4 + $0xb8] sm:$0xff] }
  0xe2   :  { %v652_v22 = vpop.f32.mrf.mxu1  ;;  %2115 = vmatpush.bf16.msrb.mxu3 %v3393_v59 }
  0xe3   :  { %v1106_v39 = vmax.f32 %v699_v13, 0.0  ;;  %v653_v52 = vadd.f32 %v652_v22, %v4097_v7  ;;  %v4426_v30 = vmul.f32 %v4213_v29, %v1104_v42  ;;  %749 = vmatmul.bf16.gmra.mxu3 %v3972_v37  ;;  %798 = vmatmul.bf16.gmra.mxu0 %v3972_v37  ;;  %v1007_v35 = vmax.f32 %v672_v3, 0.0 }
  0xe5   :  { %v4437_v4 = vmul.f32 %v4431_v48, %v1106_v39  ;;  %v1114_v13 = vmax.f32 %v653_v52, 0.0  ;;  %847 = vmatmul.bf16.gmra.mxu1 %v3972_v37  ;;  %896 = vmatmul.bf16.gmra.mxu2 %v3972_v37  ;;  %v4459_v3 = vmul.f32 %v4309_v57, %v1007_v35 }
  0xe6   :  { %v603_v19 = vpop.f32.mrf.mxu3 }
  0xe7   :  { %5986 = vst [vmem:[#allocation12_spill] sm:$0xff] %v4437_v4  ;;  %v4444_v22 = vmul.f32 %v4124_v34, %v1114_v13  ;;  %v604_v39 = vadd.f32 %v603_v19, %v4100_v28  ;;  %v4456_v13 = vld [vmem:[%s5904_s1 + $0x130] sm:$0xff] }
  0xe8   :  { %v701_v27 = vpop.f32.mrf.mxu2  ;;  %v673_v47 = vpop.f32.mrf.mxu0  ;;  %5988 = vst [vmem:[#allocation14_spill] sm:$0xff] %v4459_v3 }
  0xe9   :  { %5987 = vst [vmem:[#allocation13_spill] sm:$0xff] %v4444_v22  ;;  %v702_v52 = vadd.f32 %v701_v27, %v4284_v21  ;;  %v1113_v37 = vmax.f32 %v604_v39, 0.0  ;;  %v674_v58 = vadd.f32 %v673_v47, %v4284_v21 }
  0xea   :  { %v654_v42 = vpop.f32.mrf.mxu1 }
  0xeb   :  { %v1115_v29 = vmax.f32 %v702_v52, 0.0  ;;  %v655_v34 = vadd.f32 %v654_v42, %v4097_v7  ;;  %v4462_v19 = vmul.f32 %v4168_v0, %v1113_v37  ;;  %v1016_v27 = vmax.f32 %v674_v58, 0.0 }
  0xed   :  { %v4465_v59 = vmul.f32 %v4456_v13, %v1115_v29  ;;  %v1123_v39 = vmax.f32 %v655_v34, 0.0  ;;  %v4468_v52 = vmul.f32 %v4350_v50, %v1016_v27  ;;  %v3401_v29 = vld [vmem:[%s5907_s4 + $0xf8] sm:$0xff] }
  0xee   :  { %v605_v42 = vpop.f32.mrf.mxu3  ;;  %v3409_v50 = vld [vmem:[%s5907_s4 + $0x138] sm:$0xff]  ;;  %2164 = vmatpush.bf16.msrb.mxu0 %v3401_v29 }
  0xef   :  { %5989 = vst [vmem:[#allocation15_spill] sm:$0xff] %v4465_v59  ;;  %v4471_v47 = vmul.f32 %v4140_v49, %v1123_v39  ;;  %v606_v57 = vadd.f32 %v605_v42, %v4100_v28  ;;  %2213 = vmatpush.bf16.msrb.mxu1 %v3409_v50  ;;  %v4489_v42 = vld [vmem:[%s5904_s1 + $0x178] sm:$0xff] }
  0xf0   :  { %5990 = vst [vmem:[#allocation16_spill] sm:$0xff] %v4468_v52  ;;  %v703_v35 = vpop.f32.mrf.mxu2  ;;  %v676_v58 = vpop.f32.mrf.mxu0 }
  0xf1   :  { %v704_v0 = vadd.f32 %v703_v35, %v4284_v21  ;;  %v1122_v37 = vmax.f32 %v606_v57, 0.0  ;;  %v677_v62 = vadd.f32 %v676_v58, %v4284_v21  ;;  %v625_v58 = vadd.f32 %v4300_v41, %v4097_v7 }
  0xf2   :  { %v657_v34 = vpop.f32.mrf.mxu1 }
  0xf3   :  { %v1124_v27 = vmax.f32 %v704_v0, 0.0  ;;  %v658_v39 = vadd.f32 %v657_v34, %v4097_v7  ;;  %v4492_v35 = vmul.f32 %v4173_v1, %v1122_v37  ;;  %754 = vmatmul.bf16.gmra.mxu3 %v4014_v54  ;;  %803 = vmatmul.bf16.gmra.mxu0 %v4014_v54  ;;  %v623_v1 = vadd.f32 %v4258_v63, %v4097_v7  ;;  %v3392_v34 = vld [vmem:[%s5907_s4 + $0xb0] sm:$0xff] }
  0xf4   :  { %2116 = vmatpush.bf16.msrb.mxu3 %v3392_v34 }
  0xf5   :  { %v4498_v57 = vmul.f32 %v4489_v42, %v1124_v27  ;;  %v1132_v0 = vmax.f32 %v658_v39, 0.0  ;;  %852 = vmatmul.bf16.gmra.mxu1 %v4014_v54  ;;  %901 = vmatmul.bf16.gmra.mxu2 %v4014_v54  ;;  %v1025_v27 = vmax.f32 %v677_v62, 0.0  ;;  %v1006_v52 = vmax.f32 %v623_v1, 0.0  ;;  %v4521_v62 = vld [vmem:[%s5904_s1 + $0x1c0] sm:$0xff] }
  0xf6   :  { %v608_v37 = vpop.f32.mrf.mxu3 }
  0xf7   :  { %v4509_v50 = vmul.f32 %v4207_v23, %v1132_v0  ;;  %v609_v54 = vadd.f32 %v608_v37, %v4100_v28  ;;  %v1015_v23 = vmax.f32 %v625_v58, 0.0  ;;  %v4524_v37 = vmul.f32 %v4392_v38, %v1025_v27  ;;  %v3408_v27 = vld [vmem:[%s5907_s4 + $0x130] sm:$0xff] }
  0xf8   :  { %v706_v39 = vpop.f32.mrf.mxu2  ;;  %v678_v29 = vpop.f32.mrf.mxu0  ;;  %2214 = vmatpush.bf16.msrb.mxu1 %v3408_v27 }
  0xf9   :  { %v707_v49 = vadd.f32 %v706_v39, %v4284_v21  ;;  %v1131_v63 = vmax.f32 %v609_v54, 0.0  ;;  %v679_v41 = vadd.f32 %v678_v29, %v4284_v21  ;;  %5991 = vst [vmem:[#allocation17_spill] sm:$0xff] %v4524_v37  ;;  %v1231_v1 = vmul.f32 %v4320_v14, %v1015_v23 }
  0xfa   :  { %v659_v3 = vpop.f32.mrf.mxu1  ;;  %v4550_v14 = vperm.slane %v4085_v55, 4  ;;  %v4558_v23 = vperm.slane %v4085_v55, 5 }
  0xfb   :  { %v1133_v0 = vmax.f32 %v707_v49, 0.0  ;;  %v660_v22 = vadd.f32 %v659_v3, %v4097_v7  ;;  %v4527_v39 = vmul.f32 %v4251_v17, %v1131_v63  ;;  %v1034_v34 = vmax.f32 %v679_v41, 0.0  ;;  %v3400_v17 = vld [vmem:[%s5907_s4 + $0xf0] sm:$0xff] }
  0xfc   :  { %v1222_v3 = vmul.f32 %v4279_v12, %v1006_v52  ;;  %v684_v52 = vadd.f32 %v4154_v60, %v4284_v21  ;;  %2165 = vmatpush.bf16.msrb.mxu0 %v3400_v17  ;;  %v3478_v17 = vld [vmem:[%s5903_s0] sm:$0xff] }
  0xfd   :  { %v4530_v54 = vmul.f32 %v4521_v62, %v1133_v0  ;;  %v1141_v29 = vmax.f32 %v660_v22, 0.0  ;;  %v4533_v49 = vmul.f32 %v4431_v48, %v1034_v34  ;;  %v682_v48 = vadd.f32 %v4114_v36, %v4284_v21 }
  0xfe   :  { %v610_v38 = vpop.f32.mrf.mxu3  ;;  %v1366_v34 = vpack.c.bf16 %v1231_v1, %v1222_v3 }
  0xff   :  { %5992 = vst [vmem:[#allocation18_spill] sm:$0xff] %v4533_v49  ;;  %v4538_v58 = vmul.f32 %v4223_v33, %v1141_v29  ;;  %v611_v22 = vadd.f32 %v610_v38, %v4100_v28  ;;  %v4565_v38 = vld [vmem:[%s5904_s1 + $0x208] sm:$0xff]  ;;  %v1043_v27 = vmax.f32 %v682_v48, 0.0  ;;  %v630_v48 = vadd.f32 %v4383_v45, %v4097_v7 }
 0x100   :  { %v708_v12 = vpop.f32.mrf.mxu2  ;;  %v769_v41 = vpop.f32.mrf.mxu0 }
 0x101   :  { %v709_v63 = vadd.f32 %v708_v12, %v4284_v21  ;;  %v1140_v36 = vmax.f32 %v611_v22, 0.0  ;;  %v770_v12 = vadd.f32 %v769_v41, %v4550_v14  ;;  %v1052_v22 = vmax.f32 %v684_v52, 0.0 }
 0x102   :  { %v818_v0 = vpop.f32.mrf.mxu1  ;;  %v628_v41 = vadd.f32 %v4336_v32, %v4097_v7  ;;  %v4605_v7 = vld [vmem:[%s5904_s1 + $0x20] sm:$0xff] }
 0x103   :  { %v1142_v29 = vmax.f32 %v709_v63, 0.0  ;;  %v4568_v60 = vmul.f32 %v4256_v61, %v1140_v36  ;;  %915 = vmatmul.bf16.vlgmr.msra.gmra.mxu3 %v3478_v17  ;;  %964 = vmatmul.bf16.vlgmr.msra.gmra.mxu0 %v3478_v17  ;;  %v819_v1 = vadd.f32 %v818_v0, %v4558_v23  ;;  %v5993_v63 = vpack.c.bf16 %v4146_v53, %v4134_v46  ;;  %v3391_v0 = vld [vmem:[%s5907_s4 + $0xa8] sm:$0xff] }
 0x104   :  { %v4588_v36 = vperm.slane %v4085_v55, 6  ;;  %v1009_v46 = vmax.f32 %v770_v12, 0.0  ;;  %v4594_v53 = vperm.slane %v4085_v55, 3  ;;  %v4600_v32 = vmul.f32 %v4489_v42, %v1052_v22  ;;  %2117 = vmatpush.bf16.msrb.mxu3 %v3391_v0  ;;  %v4610_v55 = vld [vmem:[%s5904_s1 + $0x28] sm:$0xff] }
 0x105   :  { %v4575_v3 = vmul.f32 %v4565_v38, %v1142_v29  ;;  %2025 = vmatmul.bf16.vlgmr.msra.gmra.mxu1 %v5993_v63  ;;  %2074 = vmatmul.bf16.vlgmr.msra.gmra.mxu2 %v1366_v34  ;;  %v4597_v29 = vmul.f32 %v4456_v13, %v1043_v27  ;;  %v1010_v45 = vmax.f32 %v819_v1, 0.0  ;;  %v1024_v27 = vmax.f32 %v628_v41, 0.0  ;;  %v4617_v22 = vld [vmem:[%s5904_s1 + $0x68] sm:$0xff]  ;;  %v4627_v41 = vld [vmem:[%s5904_s1 + $0x70] sm:$0xff] }
 0x106   :  { %v720_v52 = vpop.f32.mrf.mxu3  ;;  %5995 = vst [vmem:[#allocation20_spill] sm:$0xff] %v4600_v32  ;;  %v1033_v63 = vmax.f32 %v630_v48, 0.0  ;;  %v4621_v0 = vmul.f32 %v4605_v7, %v1009_v46 }
 0x107   :  { %5994 = vst [vmem:[#allocation19_spill] sm:$0xff] %v4597_v29  ;;  %v721_v33 = vadd.f32 %v720_v52, %v4594_v53  ;;  %v4630_v48 = vmul.f32 %v4610_v55, %v1010_v45  ;;  %v1240_v46 = vmul.f32 %v4365_v43, %v1024_v27  ;;  %v3399_v45 = vld [vmem:[%s5907_s4 + $0xe8] sm:$0xff]  ;;  %v4653_v43 = vld [vmem:[%s5904_s1 + $0x30] sm:$0xff] }
 0x108   :  { %v867_v34 = vpop.f32.mrf.mxu2  ;;  %v771_v17 = vpop.f32.mrf.mxu0  ;;  %5996 = vst [vmem:[#allocation21_spill] sm:$0xff] %v4621_v0  ;;  %v1249_v52 = vmul.f32 %v4403_v2, %v1033_v63  ;;  %2166 = vmatpush.bf16.msrb.mxu0 %v3399_v45  ;;  %v3480_v0 = vld [vmem:[%s5903_s0 + $0x10] sm:$0xff] }
 0x109   :  { %v772_v12 = vadd.f32 %v771_v17, %v4550_v14  ;;  %v868_v42 = vadd.f32 %v867_v34, %v4588_v36  ;;  %5997 = vst [vmem:[#allocation22_spill] sm:$0xff] %v4630_v48  ;;  %v1008_v17 = vmax.f32 %v721_v33, 0.0  ;;  %v4670_v33 = vld [vmem:[%s5904_s1 + $0x60] sm:$0xff] }
 0x10a   :  { %v820_v13 = vpop.f32.mrf.mxu1  ;;  %v1375_v49 = vpack.c.bf16 %v1249_v52, %v1240_v46 }
 0x10b   :  { %v821_v1 = vadd.f32 %v820_v13, %v4558_v23  ;;  %v1018_v28 = vmax.f32 %v772_v12, 0.0  ;;  %v1011_v12 = vmax.f32 %v868_v42, 0.0  ;;  %v689_v42 = vadd.f32 %v4244_v56, %v4284_v21  ;;  %v4676_v56 = vld [vmem:[%s5904_s1 + $0x78] sm:$0xff] }
 0x10d   :  { %v1019_v34 = vmax.f32 %v821_v1, 0.0  ;;  %v4635_v13 = vmul.f32 %v4617_v22, %v1018_v28  ;;  %v3407_v1 = vld [vmem:[%s5907_s4 + $0x128] sm:$0xff]  ;;  %v687_v28 = vadd.f32 %v4197_v20, %v4284_v21  ;;  %v4679_v32 = vmul.f32 %v4653_v43, %v1011_v12 }
 0x10e   :  { %v722_v37 = vpop.f32.mrf.mxu3  ;;  %2215 = vmatpush.bf16.msrb.mxu1 %v3407_v1  ;;  %v3479_v1 = vld [vmem:[%s5903_s0 + $0x8] sm:$0xff] }
 0x10f   :  { %5998 = vst [vmem:[#allocation23_spill] sm:$0xff] %v4635_v13  ;;  %v4640_v61 = vmul.f32 %v4627_v41, %v1019_v34  ;;  %v723_v27 = vadd.f32 %v722_v37, %v4594_v53  ;;  %v4663_v34 = vld [vmem:[%s5904_s1 + $0x18] sm:$0xff] }
 0x110   :  { %v869_v63 = vpop.f32.mrf.mxu2  ;;  %v774_v37 = vpop.f32.mrf.mxu0  ;;  %6000 = vst [vmem:[#allocation25_spill] sm:$0xff] %v4679_v32  ;;  %v4682_v48 = vmul.f32 %v4663_v34, %v1008_v17  ;;  %v6004_v17 = vpack.c.bf16 %v4229_v11, %v4217_v31  ;;  %v4716_v11 = vld [vmem:[%s5904_s1 + $0xb0] sm:$0xff] }
 0x111   :  { %5999 = vst [vmem:[#allocation24_spill] sm:$0xff] %v4640_v61  ;;  %v870_v2 = vadd.f32 %v869_v63, %v4588_v36  ;;  %v1017_v29 = vmax.f32 %v723_v27, 0.0  ;;  %v775_v45 = vadd.f32 %v774_v37, %v4550_v14  ;;  %v1061_v27 = vmax.f32 %v687_v28, 0.0  ;;  %v3390_v28 = vld [vmem:[%s5907_s4 + $0xa0] sm:$0xff] }
 0x112   :  { %v823_v21 = vpop.f32.mrf.mxu1  ;;  %6001 = vst [vmem:[#allocation26_spill] sm:$0xff] %v4682_v48  ;;  %v1070_v61 = vmax.f32 %v689_v42, 0.0  ;;  %2118 = vmatpush.bf16.msrb.mxu3 %v3390_v28  ;;  %v4737_v28 = vld [vmem:[%s5904_s1 + $0x100] sm:$0xff]  ;;  %v3481_v48 = vld [vmem:[%s5903_s0 + $0x18] sm:$0xff] }
 0x113   :  { %v1020_v20 = vmax.f32 %v870_v2, 0.0  ;;  %v4685_v63 = vmul.f32 %v4670_v33, %v1017_v29  ;;  %920 = vmatmul.bf16.gmra.mxu3 %v3479_v1  ;;  %969 = vmatmul.bf16.gmra.mxu0 %v3479_v1  ;;  %v824_v46 = vadd.f32 %v823_v21, %v4558_v23  ;;  %v1027_v42 = vmax.f32 %v775_v45, 0.0  ;;  %v4721_v45 = vld [vmem:[%s5904_s1 + $0xb8] sm:$0xff]  ;;  %v4769_v29 = vld [vmem:[%s5904_s1 + $0xf0] sm:$0xff] }
 0x114   :  { %v4708_v37 = vmul.f32 %v4521_v62, %v1061_v27  ;;  %v4711_v31 = vmul.f32 %v4565_v38, %v1070_v61  ;;  %v4727_v38 = vld [vmem:[%s5904_s1 + $0xf8] sm:$0xff] }
 0x115   :  { %6002 = vst [vmem:[#allocation27_spill] sm:$0xff] %v4685_v63  ;;  %v4692_v12 = vmul.f32 %v4676_v56, %v1020_v20  ;;  %2030 = vmatmul.bf16.gmra.mxu1 %v6004_v17  ;;  %2079 = vmatmul.bf16.gmra.mxu2 %v1375_v49  ;;  %v1028_v49 = vmax.f32 %v824_v46, 0.0  ;;  %v4731_v27 = vmul.f32 %v4716_v11, %v1027_v42 }
 0x116   :  { %v725_v2 = vpop.f32.mrf.mxu3  ;;  %6005 = vst [vmem:[#allocation29_spill] sm:$0xff] %v4708_v37 }
 0x117   :  { %6003 = vst [vmem:[#allocation28_spill] sm:$0xff] %v4692_v12  ;;  %v726_v46 = vadd.f32 %v725_v2, %v4594_v53 }
 0x118   :  { %v4705_v20 = vpop.f32.mrf.mxu2  ;;  %6006 = vst [vmem:[#allocation30_spill] sm:$0xff] %v4711_v31  ;;  %v776_v21 = vpop.f32.mrf.mxu0 }
 0x119   :  { %v777_v1 = vadd.f32 %v776_v21, %v4550_v14  ;;  %6007 = vst [vmem:[#allocation31_spill] sm:$0xff] %v4731_v27  ;;  %v4740_v21 = vmul.f32 %v4721_v45, %v1028_v49  ;;  %v3406_v49 = vld [vmem:[%s5907_s4 + $0x120] sm:$0xff]  ;;  %v1026_v32 = vmax.f32 %v726_v46, 0.0 }
 0x11a   :  { %v825_v62 = vpop.f32.mrf.mxu1  ;;  %2216 = vmatpush.bf16.msrb.mxu1 %v3406_v49  ;;  %v6013_v49 = vpack.c.bf16 %v4181_v44, %v4178_v6  ;;  %v4800_v6 = vld [vmem:[%s5904_s1 + $0x140] sm:$0xff] }
 0x11b   :  { %v826_v61 = vadd.f32 %v825_v62, %v4558_v23  ;;  %v1036_v17 = vmax.f32 %v777_v1, 0.0  ;;  %6008 = vst [vmem:[#allocation32_spill] sm:$0xff] %v4740_v21  ;;  %v3398_v1 = vld [vmem:[%s5907_s4 + $0xe0] sm:$0xff]  ;;  %v4821_v21 = vld [vmem:[%s5904_s1 + $0x190] sm:$0xff] }
 0x11c   :  { %2167 = vmatpush.bf16.msrb.mxu0 %v3398_v1 }
 0x11d   :  { %v1037_v52 = vmax.f32 %v826_v61, 0.0  ;;  %v4745_v62 = vmul.f32 %v4727_v38, %v1036_v17 }
 0x11e   :  { %v727_v2 = vpop.f32.mrf.mxu3 }
 0x11f   :  { %6009 = vst [vmem:[#allocation33_spill] sm:$0xff] %v4745_v62  ;;  %v4748_v42 = vmul.f32 %v4737_v28, %v1037_v52  ;;  %v728_v61 = vadd.f32 %v727_v2, %v4594_v53  ;;  %v4764_v52 = vld [vmem:[%s5904_s1 + $0xa8] sm:$0xff] }
 0x120   :  { %v4757_v12 = vpop.f32.mrf.mxu2  ;;  %v779_v37 = vpop.f32.mrf.mxu0  ;;  %v4774_v17 = vmul.f32 %v4764_v52, %v1026_v32  ;;  %v6014_v32 = vpack.c.bf16 %v4149_v8, %v4143_v51  ;;  %v4805_v51 = vld [vmem:[%s5904_s1 + $0x148] sm:$0xff] }
 0x121   :  { %6010 = vst [vmem:[#allocation34_spill] sm:$0xff] %v4748_v42  ;;  %v1035_v2 = vmax.f32 %v728_v61, 0.0  ;;  %v780_v62 = vadd.f32 %v779_v37, %v4550_v14 }
 0x122   :  { %v828_v31 = vpop.f32.mrf.mxu1  ;;  %6011 = vst [vmem:[#allocation35_spill] sm:$0xff] %v4774_v17  ;;  %v4853_v17 = vld [vmem:[%s5904_s1 + $0x180] sm:$0xff] }
 0x123   :  { %v4777_v27 = vmul.f32 %v4769_v29, %v1035_v2  ;;  %925 = vmatmul.bf16.gmra.mxu3 %v3480_v0  ;;  %974 = vmatmul.bf16.gmra.mxu0 %v3480_v0  ;;  %v829_v1 = vadd.f32 %v828_v31, %v4558_v23  ;;  %v3389_v2 = vld [vmem:[%s5907_s4 + $0x98] sm:$0xff]  ;;  %v1045_v46 = vmax.f32 %v780_v62, 0.0  ;;  %v4811_v62 = vld [vmem:[%s5904_s1 + $0x188] sm:$0xff] }
 0x124   :  { %2119 = vmatpush.bf16.msrb.mxu3 %v3389_v2 }
 0x125   :  { %6012 = vst [vmem:[#allocation36_spill] sm:$0xff] %v4777_v27  ;;  %2035 = vmatmul.bf16.gmra.mxu1 %v6013_v49  ;;  %2084 = vmatmul.bf16.gmra.mxu2 %v6014_v32  ;;  %v1046_v44 = vmax.f32 %v829_v1, 0.0  ;;  %v4815_v61 = vmul.f32 %v4800_v6, %v1045_v46 }
 0x126   :  { %v730_v37 = vpop.f32.mrf.mxu3 }
 0x127   :  { %6015 = vst [vmem:[#allocation37_spill] sm:$0xff] %v4815_v61  ;;  %v731_v1 = vadd.f32 %v730_v37, %v4594_v53 }
 0x128   :  { %v4795_v0 = vpop.f32.mrf.mxu2  ;;  %v781_v31 = vpop.f32.mrf.mxu0 }
 0x129   :  { %v782_v8 = vadd.f32 %v781_v31, %v4550_v14  ;;  %v4824_v31 = vmul.f32 %v4805_v51, %v1046_v44  ;;  %v3405_v44 = vld [vmem:[%s5907_s4 + $0x118] sm:$0xff]  ;;  %v1044_v27 = vmax.f32 %v731_v1, 0.0 }
 0x12a   :  { %v830_v49 = vpop.f32.mrf.mxu1  ;;  %2217 = vmatpush.bf16.msrb.mxu1 %v3405_v44  ;;  %v6021_v44 = vpack.c.bf16 %v4267_v10, %v4264_v9  ;;  %v4884_v9 = vld [vmem:[%s5904_s1 + $0x1d0] sm:$0xff] }
 0x12b   :  { %v831_v32 = vadd.f32 %v830_v49, %v4558_v23  ;;  %v1054_v2 = vmax.f32 %v782_v8, 0.0  ;;  %6016 = vst [vmem:[#allocation38_spill] sm:$0xff] %v4824_v31  ;;  %v3397_v8 = vld [vmem:[%s5907_s4 + $0xd8] sm:$0xff]  ;;  %v4905_v31 = vld [vmem:[%s5904_s1 + $0x220] sm:$0xff] }
 0x12c   :  { %2168 = vmatpush.bf16.msrb.mxu0 %v3397_v8 }
 0x12d   :  { %v1055_v42 = vmax.f32 %v831_v32, 0.0  ;;  %v4829_v49 = vmul.f32 %v4811_v62, %v1054_v2 }
 0x12e   :  { %v732_v37 = vpop.f32.mrf.mxu3 }
 0x12f   :  { %6017 = vst [vmem:[#allocation39_spill] sm:$0xff] %v4829_v49  ;;  %v4832_v46 = vmul.f32 %v4821_v21, %v1055_v42  ;;  %v733_v32 = vadd.f32 %v732_v37, %v4594_v53  ;;  %v4848_v42 = vld [vmem:[%s5904_s1 + $0x138] sm:$0xff] }
 0x130   :  { %v4841_v13 = vpop.f32.mrf.mxu2  ;;  %v784_v26 = vpop.f32.mrf.mxu0  ;;  %v4858_v2 = vmul.f32 %v4848_v42, %v1044_v27  ;;  %v6022_v27 = vpack.c.bf16 %v4232_v18, %v4226_v16  ;;  %v4889_v16 = vld [vmem:[%s5904_s1 + $0x1d8] sm:$0xff] }
 0x131   :  { %6018 = vst [vmem:[#allocation40_spill] sm:$0xff] %v4832_v46  ;;  %v1053_v37 = vmax.f32 %v733_v32, 0.0  ;;  %v785_v49 = vadd.f32 %v784_v26, %v4550_v14 }
 0x132   :  { %v833_v24 = vpop.f32.mrf.mxu1  ;;  %6019 = vst [vmem:[#allocation41_spill] sm:$0xff] %v4858_v2  ;;  %v4937_v2 = vld [vmem:[%s5904_s1 + $0x210] sm:$0xff] }
 0x133   :  { %v4861_v61 = vmul.f32 %v4853_v17, %v1053_v37  ;;  %930 = vmatmul.bf16.gmra.mxu3 %v3481_v48  ;;  %979 = vmatmul.bf16.gmra.mxu0 %v3481_v48  ;;  %v834_v8 = vadd.f32 %v833_v24, %v4558_v23  ;;  %v3388_v37 = vld [vmem:[%s5907_s4 + $0x90] sm:$0xff]  ;;  %v1063_v1 = vmax.f32 %v785_v49, 0.0  ;;  %v4895_v49 = vld [vmem:[%s5904_s1 + $0x218] sm:$0xff] }
 0x134   :  { %2120 = vmatpush.bf16.msrb.mxu3 %v3388_v37 }
 0x135   :  { %6020 = vst [vmem:[#allocation42_spill] sm:$0xff] %v4861_v61  ;;  %2040 = vmatmul.bf16.gmra.mxu1 %v6021_v44  ;;  %2089 = vmatmul.bf16.gmra.mxu2 %v6022_v27  ;;  %v1064_v10 = vmax.f32 %v834_v8, 0.0  ;;  %v4899_v32 = vmul.f32 %v4884_v9, %v1063_v1 }
 0x136   :  { %v735_v26 = vpop.f32.mrf.mxu3 }
 0x137   :  { %6024 = vst [vmem:[#allocation44_spill] sm:$0xff] %v4899_v32  ;;  %v736_v8 = vadd.f32 %v735_v26, %v4594_v53 }
 0x138   :  { %v4879_v48 = vpop.f32.mrf.mxu2  ;;  %v786_v24 = vpop.f32.mrf.mxu0 }
 0x139   :  { %6023 = vst [vmem:[#allocation43_spill] sm:$0xff] %v4879_v48  ;;  %v787_v18 = vadd.f32 %v786_v24, %v4550_v14  ;;  %v4908_v24 = vmul.f32 %v4889_v16, %v1064_v10  ;;  %v3404_v10 = vld [vmem:[%s5907_s4 + $0x110] sm:$0xff]  ;;  %v1062_v61 = vmax.f32 %v736_v8, 0.0  ;;  %v6032_v8 = vld [vmem:[#allocation5_spill] sm:$0xff] }
 0x13a   :  { %v835_v44 = vpop.f32.mrf.mxu1  ;;  %2218 = vmatpush.bf16.msrb.mxu1 %v3404_v10 }
 0x13b   :  { %v836_v27 = vadd.f32 %v835_v44, %v4558_v23  ;;  %v1072_v37 = vmax.f32 %v787_v18, 0.0  ;;  %6025 = vst [vmem:[#allocation45_spill] sm:$0xff] %v4908_v24  ;;  %v3396_v18 = vld [vmem:[%s5907_s4 + $0xd0] sm:$0xff] }
 0x13c   :  { %2169 = vmatpush.bf16.msrb.mxu0 %v3396_v18  ;;  %v3482_v18 = vld [vmem:[%s5903_s0 + $0x20] sm:$0xff] }
 0x13d   :  { %v1073_v46 = vmax.f32 %v836_v27, 0.0  ;;  %v4913_v44 = vmul.f32 %v4895_v49, %v1072_v37 }
 0x13e   :  { %v737_v26 = vpop.f32.mrf.mxu3 }
 0x13f   :  { %6026 = vst [vmem:[#allocation46_spill] sm:$0xff] %v4913_v44  ;;  %v4916_v1 = vmul.f32 %v4905_v31, %v1073_v46  ;;  %v738_v27 = vadd.f32 %v737_v26, %v4594_v53  ;;  %v4932_v46 = vld [vmem:[%s5904_s1 + $0x1c8] sm:$0xff] }
 0x140   :  { %v4925_v48 = vpop.f32.mrf.mxu2  ;;  %v789_v5 = vpop.f32.mrf.mxu0  ;;  %v4944_v44 = vmul.f32 %v4932_v46, %v1062_v61  ;;  %v6031_v61 = vld [vmem:[#allocation8_spill] sm:$0xff] }
 0x141   :  { %6027 = vst [vmem:[#allocation47_spill] sm:$0xff] %v4916_v1  ;;  %v1071_v26 = vmax.f32 %v738_v27, 0.0  ;;  %v790_v4 = vadd.f32 %v789_v5, %v4550_v14  ;;  %v3417_v5 = vld [vmem:[%s5907_s4 + $0x178] sm:$0xff]  ;;  %v6029_v27 = vld [vmem:[#allocation6_spill] sm:$0xff] }
 0x142   :  { %6028 = vst [vmem:[#allocation48_spill] sm:$0xff] %v4925_v48  ;;  %v838_v37 = vpop.f32.mrf.mxu1  ;;  %2262 = vmatpush.bf16.msrb.mxu2 %v3417_v5 }
 0x143   :  { %v839_v32 = vadd.f32 %v838_v37, %v4558_v23  ;;  %v4947_v48 = vmul.f32 %v4937_v2, %v1071_v26  ;;  %v1081_v63 = vmax.f32 %v790_v4, 0.0  ;;  %935 = vmatmul.bf16.gmra.mxu3 %v3482_v18  ;;  %984 = vmatmul.bf16.gmra.mxu0 %v3482_v18  ;;  %v6030_v37 = vpack.c.bf16 %v4345_v15, %v6029_v27  ;;  %v3387_v15 = vld [vmem:[%s5907_s4 + $0x88] sm:$0xff] }
 0x144   :  { %v6033_v26 = vpack.c.bf16 %v6031_v61, %v6032_v8  ;;  %2121 = vmatpush.bf16.msrb.mxu3 %v3387_v15  ;;  %v3415_v18 = vld [vmem:[%s5907_s4 + $0x168] sm:$0xff] }
 0x145   :  { %v1082_v10 = vmax.f32 %v839_v32, 0.0  ;;  %2045 = vmatmul.bf16.gmra.mxu1 %v6030_v37  ;;  %v4962_v4 = vmul.f32 %v4605_v7, %v1081_v63  ;;  %v3416_v7 = vld [vmem:[%s5907_s4 + $0x170] sm:$0xff] }
 0x146   :  { %2094 = vmatmul.bf16.gmra.mxu2 %v6033_v26  ;;  %v740_v1 = vpop.f32.mrf.mxu3 }
 0x147   :  { %v4967_v24 = vmul.f32 %v4610_v55, %v1082_v10  ;;  %v741_v32 = vadd.f32 %v740_v1, %v4594_v53  ;;  %2263 = vmatpush.bf16.msrb.mxu2 %v3416_v7 }
 0x148   :  { %v887_v27 = vpop.f32.mrf.mxu2  ;;  %v791_v8 = vpop.f32.mrf.mxu0 }
 0x149   :  { %v888_v63 = vadd.f32 %v887_v27, %v4588_v36  ;;  %v1080_v5 = vmax.f32 %v741_v32, 0.0  ;;  %v792_v55 = vadd.f32 %v791_v8, %v4550_v14  ;;  %v3395_v8 = vld [vmem:[%s5907_s4 + $0xc8] sm:$0xff] }
 0x14a   :  { %v840_v10 = vpop.f32.mrf.mxu1  ;;  %2170 = vmatpush.bf16.msrb.mxu0 %v3395_v8  ;;  %v3483_v8 = vld [vmem:[%s5903_s0 + $0x28] sm:$0xff] }
 0x14b   :  { %v1083_v37 = vmax.f32 %v888_v63, 0.0  ;;  %v841_v61 = vadd.f32 %v840_v10, %v4558_v23  ;;  %v4980_v26 = vmul.f32 %v4663_v34, %v1080_v5  ;;  %v1090_v1 = vmax.f32 %v792_v55, 0.0  ;;  %2264 = vmatpush.bf16.msrb.mxu2 %v3415_v18 }
 0x14d   :  { %v4986_v27 = vmul.f32 %v4653_v43, %v1083_v37  ;;  %v1091_v15 = vmax.f32 %v841_v61, 0.0  ;;  %v4991_v7 = vmul.f32 %v4617_v22, %v1090_v1  ;;  %v3403_v43 = vld [vmem:[%s5907_s4 + $0x108] sm:$0xff]  ;;  %v3414_v22 = vld [vmem:[%s5907_s4 + $0x160] sm:$0xff] }
 0x14e   :  { %v742_v34 = vpop.f32.mrf.mxu3  ;;  %2219 = vmatpush.bf16.msrb.mxu1 %v3403_v43  ;;  %v3413_v43 = vld [vmem:[%s5907_s4 + $0x158] sm:$0xff] }
 0x14f   :  { %6034 = vst [vmem:[#allocation6_spill] sm:$0xff] %v4986_v27  ;;  %v4994_v63 = vmul.f32 %v4627_v41, %v1091_v15  ;;  %v743_v5 = vadd.f32 %v742_v34, %v4594_v53  ;;  %2265 = vmatpush.bf16.msrb.mxu2 %v3414_v22  ;;  %v6036_v22 = vpack.c.bf16 %v4426_v30, %v4387_v40  ;;  %v3386_v40 = vld [vmem:[%s5907_s4 + $0x80] sm:$0xff] }
 0x150   :  { %v889_v55 = vpop.f32.mrf.mxu2  ;;  %v794_v10 = vpop.f32.mrf.mxu0  ;;  %2122 = vmatpush.bf16.msrb.mxu3 %v3386_v40  ;;  %v5473_v27 = vld [vmem:[%s5904_s1 + $0x1a0] sm:$0xff] }
 0x151   :  { %v890_v18 = vadd.f32 %v889_v55, %v4588_v36  ;;  %v1089_v61 = vmax.f32 %v743_v5, 0.0  ;;  %v795_v1 = vadd.f32 %v794_v10, %v4550_v14 }
 0x152   :  { %v843_v15 = vpop.f32.mrf.mxu1 }
 0x153   :  { %v1092_v34 = vmax.f32 %v890_v18, 0.0  ;;  %v844_v32 = vadd.f32 %v843_v15, %v4558_v23  ;;  %v5014_v59 = vmul.f32 %v4670_v33, %v1089_v61  ;;  %v1099_v41 = vmax.f32 %v795_v1, 0.0  ;;  %940 = vmatmul.bf16.gmra.mxu3 %v3483_v8  ;;  %989 = vmatmul.bf16.gmra.mxu0 %v3483_v8  ;;  %v6037_v33 = vld [vmem:[#allocation10_spill] sm:$0xff]  ;;  %v6058_v61 = vld [vmem:[#allocation21_spill] sm:$0xff] }
 0x154   :  { %v6038_v18 = vpack.c.bf16 %v4406_v25, %v6037_v33  ;;  %2266 = vmatpush.bf16.msrb.mxu2 %v3413_v43  ;;  %v3412_v25 = vld [vmem:[%s5907_s4 + $0x150] sm:$0xff] }
 0x155   :  { %v5023_v5 = vmul.f32 %v4676_v56, %v1092_v34  ;;  %v1100_v55 = vmax.f32 %v844_v32, 0.0  ;;  %2050 = vmatmul.bf16.gmra.mxu1 %v6036_v22  ;;  %v5032_v10 = vmul.f32 %v4716_v11, %v1099_v41 }
 0x156   :  { %2099 = vmatmul.bf16.gmra.mxu2 %v6038_v18  ;;  %v745_v56 = vpop.f32.mrf.mxu3  ;;  %v3411_v18 = vld [vmem:[%s5907_s4 + $0x148] sm:$0xff] }
 0x157   :  { %6035 = vst [vmem:[#allocation8_spill] sm:$0xff] %v5023_v5  ;;  %v5037_v1 = vmul.f32 %v4721_v45, %v1100_v55  ;;  %v746_v30 = vadd.f32 %v745_v56, %v4594_v53  ;;  %v5052_v55 = vld [vmem:[%s5904_s1 + $0xc0] sm:$0xff] }
 0x158   :  { %v892_v32 = vpop.f32.mrf.mxu2  ;;  %v796_v41 = vpop.f32.mrf.mxu0  ;;  %2267 = vmatpush.bf16.msrb.mxu2 %v3412_v25 }
 0x159   :  { %v893_v11 = vadd.f32 %v892_v32, %v4588_v36  ;;  %v1098_v15 = vmax.f32 %v746_v30, 0.0  ;;  %v797_v45 = vadd.f32 %v796_v41, %v4550_v14  ;;  %v3402_v41 = vld [vmem:[%s5907_s4 + $0x100] sm:$0xff] }
 0x15a   :  { %v845_v34 = vpop.f32.mrf.mxu1  ;;  %2220 = vmatpush.bf16.msrb.mxu1 %v3402_v41  ;;  %v3484_v41 = vld [vmem:[%s5903_s0 + $0x30] sm:$0xff] }
 0x15b   :  { %v1101_v8 = vmax.f32 %v893_v11, 0.0  ;;  %v846_v43 = vadd.f32 %v845_v34, %v4558_v23  ;;  %v5055_v22 = vmul.f32 %v4764_v52, %v1098_v15  ;;  %v1108_v33 = vmax.f32 %v797_v45, 0.0  ;;  %v3394_v11 = vld [vmem:[%s5907_s4 + $0xc0] sm:$0xff] }
 0x15c   :  { %2268 = vmatpush.bf16.msrb.mxu2 %v3411_v18  ;;  %2171 = vmatpush.bf16.msrb.mxu0 %v3394_v11 }
 0x15d   :  { %v5061_v56 = vmul.f32 %v5052_v55, %v1101_v8  ;;  %v1109_v40 = vmax.f32 %v846_v43, 0.0  ;;  %v5066_v32 = vmul.f32 %v4727_v38, %v1108_v33  ;;  %v3410_v38 = vld [vmem:[%s5907_s4 + $0x140] sm:$0xff] }
 0x15e   :  { %v747_v52 = vpop.f32.mrf.mxu3 }
 0x15f   :  { %6039 = vst [vmem:[#allocation5_spill] sm:$0xff] %v5061_v56  ;;  %v5069_v25 = vmul.f32 %v4737_v28, %v1109_v40  ;;  %v748_v15 = vadd.f32 %v747_v52, %v4594_v53  ;;  %v5091_v28 = vld [vmem:[%s5904_s1 + $0x108] sm:$0xff]  ;;  %v5542_v56 = vld [vmem:[%s5904_s1 + $0x230] sm:$0xff] }
 0x160   :  { %v894_v45 = vpop.f32.mrf.mxu2  ;;  %v799_v8 = vpop.f32.mrf.mxu0  ;;  %2269 = vmatpush.bf16.msrb.mxu2 %v3410_v38 }
 0x161   :  { %v895_v34 = vadd.f32 %v894_v45, %v4588_v36  ;;  %v1107_v33 = vmax.f32 %v748_v15, 0.0  ;;  %v800_v18 = vadd.f32 %v799_v8, %v4550_v14  ;;  %v6042_v8 = vld [vmem:[#allocation13_spill] sm:$0xff] }
 0x162   :  { %v848_v40 = vpop.f32.mrf.mxu1 }
 0x163   :  { %v1110_v52 = vmax.f32 %v895_v34, 0.0  ;;  %v849_v30 = vadd.f32 %v848_v40, %v4558_v23  ;;  %v5094_v45 = vmul.f32 %v4769_v29, %v1107_v33  ;;  %v1117_v11 = vmax.f32 %v800_v18, 0.0  ;;  %945 = vmatmul.bf16.gmra.mxu3 %v3484_v41  ;;  %994 = vmatmul.bf16.gmra.mxu0 %v3484_v41  ;;  %v3425_v33 = vld [vmem:[%s5907_s4 + $0x1b8] sm:$0xff] }
 0x164   :  { %v6041_v34 = vpack.c.bf16 %v4492_v35, %v4462_v19  ;;  %v6043_v40 = vpack.c.bf16 %v4471_v47, %v6042_v8  ;;  %2311 = vmatpush.bf16.msra.mxu3 %v3425_v33 }
 0x165   :  { %v5100_v15 = vmul.f32 %v5091_v28, %v1110_v52  ;;  %v1118_v38 = vmax.f32 %v849_v30, 0.0  ;;  %v5109_v29 = vmul.f32 %v4800_v6, %v1117_v11 }
 0x166   :  { %2055 = vmatmul.bf16.gmra.mxu1 %v6041_v34  ;;  %2104 = vmatmul.bf16.gmra.mxu2 %v6043_v40  ;;  %v750_v52 = vpop.f32.mrf.mxu3 }
 0x167   :  { %6040 = vst [vmem:[#allocation10_spill] sm:$0xff] %v5100_v15  ;;  %v5117_v30 = vmul.f32 %v4805_v51, %v1118_v38  ;;  %v751_v19 = vadd.f32 %v750_v52, %v4594_v53  ;;  %v5126_v51 = vld [vmem:[%s5904_s1 + $0x150] sm:$0xff] }
 0x168   :  { %v897_v35 = vpop.f32.mrf.mxu2  ;;  %v801_v41 = vpop.f32.mrf.mxu0 }
 0x169   :  { %v898_v47 = vadd.f32 %v897_v35, %v4588_v36  ;;  %v1116_v6 = vmax.f32 %v751_v19, 0.0  ;;  %v802_v11 = vadd.f32 %v801_v41, %v4550_v14 }
 0x16a   :  { %v850_v34 = vpop.f32.mrf.mxu1 }
 0x16b   :  { %v1119_v8 = vmax.f32 %v898_v47, 0.0  ;;  %v851_v40 = vadd.f32 %v850_v34, %v4558_v23  ;;  %v5129_v38 = vmul.f32 %v4848_v42, %v1116_v6  ;;  %v1126_v52 = vmax.f32 %v802_v11, 0.0  ;;  %v3433_v42 = vld [vmem:[%s5907_s4 + $0x1f8] sm:$0xff] }
 0x16c   :  { %v3441_v6 = vld [vmem:[%s5907_s4 + $0x238] sm:$0xff]  ;;  %2360 = vmatpush.bf16.msra.mxu0 %v3433_v42 }
 0x16d   :  { %v5132_v33 = vmul.f32 %v5126_v51, %v1119_v8  ;;  %v1127_v35 = vmax.f32 %v851_v40, 0.0  ;;  %v5135_v19 = vmul.f32 %v4811_v62, %v1126_v52  ;;  %v873_v62 = vadd.f32 %v4705_v20, %v4588_v36  ;;  %2409 = vmatpush.bf16.msra.mxu1 %v3441_v6  ;;  %v5161_v20 = vld [vmem:[%s5904_s1 + $0x198] sm:$0xff] }
 0x16e   :  { %v752_v41 = vpop.f32.mrf.mxu3 }
 0x16f   :  { %v5138_v47 = vmul.f32 %v4821_v21, %v1127_v35  ;;  %v753_v34 = vadd.f32 %v752_v41, %v4594_v53  ;;  %v875_v21 = vadd.f32 %v4757_v12, %v4588_v36  ;;  %v1029_v42 = vmax.f32 %v873_v62, 0.0  ;;  %v3424_v62 = vld [vmem:[%s5907_s4 + $0x1b0] sm:$0xff] }
 0x170   :  { %v899_v43 = vpop.f32.mrf.mxu2  ;;  %v804_v40 = vpop.f32.mrf.mxu0  ;;  %2312 = vmatpush.bf16.msra.mxu3 %v3424_v62 }
 0x171   :  { %v900_v8 = vadd.f32 %v899_v43, %v4588_v36  ;;  %v1125_v35 = vmax.f32 %v753_v34, 0.0  ;;  %v805_v41 = vadd.f32 %v804_v40, %v4550_v14  ;;  %v3485_v34 = vld [vmem:[%s5903_s0 + $0x38] sm:$0xff]  ;;  %v1038_v6 = vmax.f32 %v875_v21, 0.0 }
 0x172   :  { %v853_v18 = vpop.f32.mrf.mxu1  ;;  %v6044_v40 = vpack.c.bf16 %v4568_v60, %v4527_v39 }
 0x173   :  { %v1128_v37 = vmax.f32 %v900_v8, 0.0  ;;  %v854_v11 = vadd.f32 %v853_v18, %v4558_v23  ;;  %v5164_v12 = vmul.f32 %v4853_v17, %v1125_v35  ;;  %v1135_v43 = vmax.f32 %v805_v41, 0.0  ;;  %950 = vmatmul.bf16.gmra.mxu3 %v3485_v34  ;;  %999 = vmatmul.bf16.gmra.mxu0 %v3485_v34 }
 0x174   :  { %v6045_v17 = vpack.c.bf16 %v4538_v58, %v4509_v50  ;;  %v5191_v50 = vmul.f32 %v5052_v55, %v1029_v42  ;;  %v5194_v58 = vmul.f32 %v5091_v28, %v1038_v6 }
 0x175   :  { %v5170_v8 = vmul.f32 %v5161_v20, %v1128_v37  ;;  %v1136_v18 = vmax.f32 %v854_v11, 0.0  ;;  %v5179_v35 = vmul.f32 %v4884_v9, %v1135_v43  ;;  %v6057_v37 = vld [vmem:[#allocation23_spill] sm:$0xff] }
 0x176   :  { %2060 = vmatmul.bf16.gmra.mxu1 %v6044_v40  ;;  %2109 = vmatmul.bf16.gmra.mxu2 %v6045_v17  ;;  %v755_v21 = vpop.f32.mrf.mxu3  ;;  %6048 = vst [vmem:[#allocation50_spill] sm:$0xff] %v5191_v50  ;;  %v5202_v17 = vld [vmem:[%s5904_s1 + $0x1e0] sm:$0xff]  ;;  %v6059_v50 = vpack.c.bf16 %v6057_v37, %v6058_v61 }
 0x177   :  { %6046 = vst [vmem:[#allocation13_spill] sm:$0xff] %v5179_v35  ;;  %v5187_v11 = vmul.f32 %v4889_v16, %v1136_v18  ;;  %v756_v39 = vadd.f32 %v755_v21, %v4594_v53  ;;  %v3486_v61 = vld [vmem:[%s5906_s3] sm:$0xff] }
 0x178   :  { %v902_v60 = vpop.f32.mrf.mxu2  ;;  %6049 = vst [vmem:[#allocation51_spill] sm:$0xff] %v5194_v58  ;;  %v806_v41 = vpop.f32.mrf.mxu0  ;;  %v5277_v37 = vperm.slane %v3486_v61, 7  ;;  %v6073_v58 = vld [vmem:[#allocation17_spill] sm:$0xff]  ;;  %v6082_v35 = vld [vmem:[#allocation32_spill] sm:$0xff] }
 0x179   :  { %6047 = vst [vmem:[#allocation49_spill] sm:$0xff] %v5187_v11  ;;  %v903_v9 = vadd.f32 %v902_v60, %v4588_v36  ;;  %v1134_v43 = vmax.f32 %v756_v39, 0.0  ;;  %v807_v34 = vadd.f32 %v806_v41, %v4550_v14 }
 0x17a   :  { %v855_v40 = vpop.f32.mrf.mxu1 }
 0x17b   :  { %v1137_v16 = vmax.f32 %v903_v9, 0.0  ;;  %v856_v18 = vadd.f32 %v855_v40, %v4558_v23  ;;  %v5205_v55 = vmul.f32 %v4932_v46, %v1134_v43  ;;  %v1144_v28 = vmax.f32 %v807_v34, 0.0  ;;  %v3432_v23 = vld [vmem:[%s5907_s4 + $0x1f0] sm:$0xff] }
 0x17c   :  { %v3440_v46 = vld [vmem:[%s5907_s4 + $0x230] sm:$0xff]  ;;  %2361 = vmatpush.bf16.msra.mxu0 %v3432_v23  ;;  %v878_v43 = vadd.f32 %v4795_v0, %v4588_v36  ;;  %v5247_v0 = vld [vmem:[%s5904_s1 + $0x228] sm:$0xff] }
 0x17d   :  { %v5208_v42 = vmul.f32 %v5202_v17, %v1137_v16  ;;  %v1145_v6 = vmax.f32 %v856_v18, 0.0  ;;  %v5213_v62 = vmul.f32 %v4895_v49, %v1144_v28  ;;  %v5228_v49 = vld [vmem:[%s5906_s3 + $0x8] ss:$0 sm:$0xff]  ;;  %2410 = vmatpush.bf16.msra.mxu1 %v3440_v46  ;;  %v6051_v46 = vld [vmem:[#allocation16_spill] sm:$0xff]  ;;  %s3513_s3 = smov [#allocation2]  }
 0x17e   :  { %v757_v39 = vpop.f32.mrf.mxu3  ;;  %v1047_v40 = vmax.f32 %v878_v43, 0.0  ;;  %s2639_s19 = sshll.u32 %s3513_s3, 4  ;;  %s2640_s19 = int_to_ptr.vmem [resolvable:$true] %s2639_s19 }
 0x17f   :  { %v5222_v21 = vmul.f32 %v4905_v31, %v1145_v6  ;;  %v758_v60 = vadd.f32 %v757_v39, %v4594_v53  ;;  %v880_v31 = vadd.f32 %v4841_v13, %v4588_v36  ;;  %v5242_v6 = vld [vmem:[%s5908_s5] ss:$0 sm:$0xff]  ;;  %v6052_v39 = vld [vmem:[#allocation14_spill] sm:$0xff] }
 0x180   :  { %v904_v9 = vpop.f32.mrf.mxu2  ;;  %v965_v53 = vpop.f32.mrf.mxu0 }
 0x181   :  { %6050 = vst [vmem:[#allocation52_spill] sm:$0xff] %v5222_v21  ;;  %v905_v34 = vadd.f32 %v904_v9, %v4588_v36  ;;  %v1143_v16 = vmax.f32 %v758_v60, 0.0  ;;  %v966_v23 = vadd.f32 %v5228_v49, %v965_v53  ;;  %v6053_v60 = vpack.c.bf16 %v6051_v46, %v6052_v39  ;;  %v6054_v9 = vld [vmem:[#allocation27_spill] sm:$0xff]  ;;  %v3423_v46 = vld [vmem:[%s5907_s4 + $0x1a8] sm:$0xff] }
 0x182   :  { %v2026_v18 = vpop.f32.mrf.mxu1  ;;  %v1056_v41 = vmax.f32 %v880_v31, 0.0  ;;  %2313 = vmatpush.bf16.msra.mxu3 %v3423_v46  ;;  %v5280_v39 = vmul.f32 %v5126_v51, %v1047_v40  ;;  %v3431_v46 = vld [vmem:[%s5907_s4 + $0x1e8] sm:$0xff] }
 0x183   :  { %v1146_v28 = vmax.f32 %v905_v34, 0.0  ;;  %v5250_v13 = vmul.f32 %v4937_v2, %v1143_v16  ;;  %2123 = vmatmul.bf16.vlgmr.msrb.gmra.mxu3 %v6053_v60  ;;  %v6055_v34 = vld [vmem:[#allocation26_spill] sm:$0xff]  ;;  %v6060_v2 = vld [vmem:[#allocation24_spill] sm:$0xff]  ;;  %v2027_v43 = vadd.f32 %v5242_v6, %v2026_v18  ;;  %2362 = vmatpush.bf16.msra.mxu0 %v3431_v46 }
 0x184   :  { %v6056_v14 = vpack.c.bf16 %v6054_v9, %v6055_v34  ;;  %v6061_v16 = vld [vmem:[#allocation22_spill] sm:$0xff]  ;;  %6063 = vst [vmem:[#allocation16_spill] sm:$0xff] %v5280_v39  ;;  %v5283_v60 = vmul.f32 %v5161_v20, %v1056_v41  ;;  %v5288_v18 = vld [vmem:[%s5904_s1 + $0x40] sm:$0xff] }
 0x185   :  { %v5260_v52 = vmul.f32 %v5247_v0, %v1146_v28  ;;  %v6062_v53 = vpack.c.bf16 %v6060_v2, %v6061_v16  ;;  %v1013_v28 = vmax.f32 %v966_v23, 0.0  ;;  %v5296_v16 = vld [vmem:[%s5904_s1 + $0x88] sm:$0xff] }
 0x186   :  { %2172 = vmatmul.bf16.vlgmr.msrb.gmra.mxu0 %v6056_v14  ;;  %2221 = vmatmul.bf16.vlgmr.msrb.gmra.mxu1 %v6059_v50  ;;  %v916_v31 = vpop.f32.mrf.mxu3  ;;  %6064 = vst [vmem:[#allocation14_spill] sm:$0xff] %v5283_v60  ;;  %v6069_v14 = vld [vmem:[#allocation48_spill] sm:$0xff]  ;;  %v6072_v60 = vld [vmem:[#allocation18_spill] sm:$0xff] }
 0x187   :  { %2270 = vmatmul.bf16.vlgmr.msrb.gmra.mxu2 %v6062_v53  ;;  %v5299_v51 = vmul.f32 %v5288_v18, %v1013_v28  ;;  %v917_v20 = vadd.f32 %v916_v31, %v5277_v37  ;;  %v885_v39 = vadd.f32 %v6069_v14, %v4588_v36 }
 0x188   :  { %v2075_v50 = vpop.f32.mrf.mxu2  ;;  %v967_v9 = vpop.f32.mrf.mxu0 }
 0x189   :  { %v5290_v23 = vadd.f32 %v2075_v50, %v2027_v43  ;;  %v968_v34 = vadd.f32 %v5228_v49, %v967_v9  ;;  %6066 = vst [vmem:[#allocation26_spill] sm:$0xff] %v5299_v51  ;;  %v3439_v43 = vld [vmem:[%s5907_s4 + $0x228] sm:$0xff]  ;;  %v1012_v50 = vmax.f32 %v917_v20, 0.0  ;;  %v5329_v20 = vld [vmem:[%s5904_s1 + $0x80] sm:$0xff] }
 0x18a   :  { %v2028_v2 = vpop.f32.mrf.mxu1  ;;  %2411 = vmatpush.bf16.msra.mxu1 %v3439_v43  ;;  %v6075_v51 = vld [vmem:[#allocation36_spill] sm:$0xff] }
 0x18b   :  { %6065 = vst [vmem:[#allocation27_spill] sm:$0xff] %v5290_v23  ;;  %v1022_v41 = vmax.f32 %v968_v34, 0.0  ;;  %v2029_v28 = vadd.f32 %v5242_v6, %v2028_v2  ;;  %v5324_v2 = vld [vmem:[%s5904_s1 + $0x38] sm:$0xff]  ;;  %v6074_v23 = vpack.c.bf16 %v6072_v60, %v6073_v58  ;;  %v3422_v58 = vld [vmem:[%s5907_s4 + $0x1a0] sm:$0xff] }
 0x18c   :  { %2314 = vmatpush.bf16.msra.mxu3 %v3422_v58 }
 0x18d   :  { %v5305_v53 = vmul.f32 %v5296_v16, %v1022_v41  ;;  %v6068_v41 = vld [vmem:[#allocation43_spill] sm:$0xff] }
 0x18e   :  { %v918_v61 = vpop.f32.mrf.mxu3  ;;  %v883_v40 = vadd.f32 %v6068_v41, %v4588_v36  ;;  %v5334_v41 = vmul.f32 %v5324_v2, %v1012_v50  ;;  %v6081_v50 = vld [vmem:[#allocation34_spill] sm:$0xff] }
 0x18f   :  { %6067 = vst [vmem:[#allocation23_spill] sm:$0xff] %v5305_v53  ;;  %v919_v9 = vadd.f32 %v918_v61, %v5277_v37  ;;  %v6076_v53 = vld [vmem:[#allocation35_spill] sm:$0xff] }
 0x190   :  { %v2077_v34 = vpop.f32.mrf.mxu2  ;;  %v970_v46 = vpop.f32.mrf.mxu0  ;;  %6071 = vst [vmem:[#allocation24_spill] sm:$0xff] %v5334_v41  ;;  %v6077_v11 = vpack.c.bf16 %v6075_v51, %v6076_v53 }
 0x191   :  { %v5331_v61 = vadd.f32 %v2077_v34, %v2029_v28  ;;  %v1021_v43 = vmax.f32 %v919_v9, 0.0  ;;  %v971_v14 = vadd.f32 %v5228_v49, %v970_v46  ;;  %v1065_v28 = vmax.f32 %v883_v40, 0.0  ;;  %v6078_v9 = vld [vmem:[#allocation33_spill] sm:$0xff]  ;;  %v6092_v46 = vld [vmem:[#allocation20_spill] sm:$0xff] }
 0x192   :  { %v2031_v31 = vpop.f32.mrf.mxu1  ;;  %v1074_v34 = vmax.f32 %v885_v39, 0.0 }
 0x193   :  { %6070 = vst [vmem:[#allocation21_spill] sm:$0xff] %v5331_v61  ;;  %v5337_v36 = vmul.f32 %v5329_v20, %v1021_v43  ;;  %2128 = vmatmul.bf16.gmra.mxu3 %v6074_v23  ;;  %v6079_v61 = vld [vmem:[#allocation31_spill] sm:$0xff]  ;;  %v6083_v43 = vpack.c.bf16 %v6081_v50, %v6082_v35  ;;  %v2032_v60 = vadd.f32 %v5242_v6, %v2031_v31  ;;  %v1031_v23 = vmax.f32 %v971_v14, 0.0  ;;  %v3430_v50 = vld [vmem:[%s5907_s4 + $0x1e0] sm:$0xff] }
 0x194   :  { %v6080_v21 = vpack.c.bf16 %v6078_v9, %v6079_v61  ;;  %v5359_v51 = vmul.f32 %v5202_v17, %v1065_v28  ;;  %v5367_v35 = vld [vmem:[%s5904_s1 + $0xd0] sm:$0xff]  ;;  %v5375_v14 = vld [vmem:[%s5904_s1 + $0x118] sm:$0xff]  ;;  %2363 = vmatpush.bf16.msra.mxu0 %v3430_v50 }
 0x195   :  { %v5378_v17 = vmul.f32 %v5367_v35, %v1031_v23 }
 0x196   :  { %2177 = vmatmul.bf16.gmra.mxu0 %v6077_v11  ;;  %2226 = vmatmul.bf16.gmra.mxu1 %v6080_v21  ;;  %v921_v11 = vpop.f32.mrf.mxu3  ;;  %6084 = vst [vmem:[#allocation22_spill] sm:$0xff] %v5359_v51  ;;  %v5362_v21 = vmul.f32 %v5247_v0, %v1074_v34  ;;  %v6093_v51 = vld [vmem:[#allocation19_spill] sm:$0xff] }
 0x197   :  { %2275 = vmatmul.bf16.gmra.mxu2 %v6083_v43  ;;  %6087 = vst [vmem:[#allocation18_spill] sm:$0xff] %v5378_v17  ;;  %v922_v0 = vadd.f32 %v921_v11, %v5277_v37  ;;  %v3438_v43 = vld [vmem:[%s5907_s4 + $0x220] sm:$0xff] }
 0x198   :  { %v2080_v39 = vpop.f32.mrf.mxu2  ;;  %6085 = vst [vmem:[#allocation43_spill] sm:$0xff] %v5362_v21  ;;  %v972_v53 = vpop.f32.mrf.mxu0  ;;  %2412 = vmatpush.bf16.msra.mxu1 %v3438_v43  ;;  %v6094_v21 = vpack.c.bf16 %v6092_v46, %v6093_v51  ;;  %v6096_v17 = vld [vmem:[#allocation41_spill] sm:$0xff] }
 0x199   :  { %v5369_v40 = vadd.f32 %v2080_v39, %v2032_v60  ;;  %v973_v31 = vadd.f32 %v5228_v49, %v972_v53  ;;  %v1030_v23 = vmax.f32 %v922_v0, 0.0 }
 0x19a   :  { %v2033_v61 = vpop.f32.mrf.mxu1 }
 0x19b   :  { %6086 = vst [vmem:[#allocation48_spill] sm:$0xff] %v5369_v40  ;;  %v1040_v28 = vmax.f32 %v973_v31, 0.0  ;;  %v2034_v58 = vadd.f32 %v5242_v6, %v2033_v61  ;;  %v5399_v31 = vld [vmem:[%s5904_s1 + $0xc8] sm:$0xff] }
 0x19c   :  { %v5409_v50 = vmul.f32 %v5399_v31, %v1030_v23  ;;  %v6095_v40 = vld [vmem:[#allocation42_spill] sm:$0xff] }
 0x19d   :  { %v5384_v9 = vmul.f32 %v5375_v14, %v1040_v28  ;;  %v5404_v28 = vld [vmem:[%s5904_s1 + $0x110] sm:$0xff] }
 0x19e   :  { %v923_v60 = vpop.f32.mrf.mxu3  ;;  %6090 = vst [vmem:[#allocation35_spill] sm:$0xff] %v5409_v50  ;;  %v6102_v23 = vld [vmem:[#allocation38_spill] sm:$0xff]  ;;  %v6112_v50 = vpack.c.bf16 %v4947_v48, %v4944_v44 }
 0x19f   :  { %6088 = vst [vmem:[#allocation17_spill] sm:$0xff] %v5384_v9  ;;  %v924_v11 = vadd.f32 %v923_v60, %v5277_v37  ;;  %v6097_v9 = vpack.c.bf16 %v6095_v40, %v6096_v17 }
 0x1a0   :  { %v2082_v39 = vpop.f32.mrf.mxu2  ;;  %v975_v0 = vpop.f32.mrf.mxu0 }
 0x1a1   :  { %v5406_v61 = vadd.f32 %v2082_v39, %v2034_v58  ;;  %v1039_v60 = vmax.f32 %v924_v11, 0.0  ;;  %v976_v53 = vadd.f32 %v5228_v49, %v975_v0  ;;  %v6098_v58 = vld [vmem:[#allocation39_spill] sm:$0xff]  ;;  %v6099_v39 = vld [vmem:[#allocation37_spill] sm:$0xff] }
 0x1a2   :  { %v2036_v34 = vpop.f32.mrf.mxu1  ;;  %v6100_v11 = vpack.c.bf16 %v6098_v58, %v6099_v39  ;;  %v3421_v0 = vld [vmem:[%s5907_s4 + $0x198] sm:$0xff]  ;;  %v5444_v39 = vld [vmem:[%s5904_s1 + $0x1a8] sm:$0xff] }
 0x1a3   :  { %6089 = vst [vmem:[#allocation36_spill] sm:$0xff] %v5406_v61  ;;  %v5412_v43 = vmul.f32 %v5404_v28, %v1039_v60  ;;  %2133 = vmatmul.bf16.gmra.mxu3 %v6094_v21  ;;  %v6101_v61 = vld [vmem:[#allocation40_spill] sm:$0xff]  ;;  %v2037_v51 = vadd.f32 %v5242_v6, %v2036_v34  ;;  %v1049_v40 = vmax.f32 %v976_v53, 0.0 }
 0x1a4   :  { %v6103_v41 = vpack.c.bf16 %v6101_v61, %v6102_v23  ;;  %2315 = vmatpush.bf16.msra.mxu3 %v3421_v0  ;;  %v5468_v23 = vld [vmem:[%s5904_s1 + $0x158] sm:$0xff] }
 0x1a5   :  { %6091 = vst [vmem:[#allocation33_spill] sm:$0xff] %v5412_v43 }
 0x1a6   :  { %2182 = vmatmul.bf16.gmra.mxu0 %v6097_v9  ;;  %2231 = vmatmul.bf16.gmra.mxu1 %v6100_v11  ;;  %v926_v21 = vpop.f32.mrf.mxu3  ;;  %v5436_v9 = vld [vmem:[%s5904_s1 + $0x160] sm:$0xff] }
 0x1a7   :  { %2280 = vmatmul.bf16.gmra.mxu2 %v6103_v41  ;;  %v5447_v34 = vmul.f32 %v5436_v9, %v1049_v40  ;;  %v927_v53 = vadd.f32 %v926_v21, %v5277_v37 }
 0x1a8   :  { %v2085_v17 = vpop.f32.mrf.mxu2  ;;  %v977_v41 = vpop.f32.mrf.mxu0 }
 0x1a9   :  { %v5438_v61 = vadd.f32 %v2085_v17, %v2037_v51  ;;  %v978_v60 = vadd.f32 %v5228_v49, %v977_v41  ;;  %6105 = vst [vmem:[#allocation34_spill] sm:$0xff] %v5447_v34  ;;  %v3429_v51 = vld [vmem:[%s5907_s4 + $0x1d8] sm:$0xff]  ;;  %v1048_v46 = vmax.f32 %v927_v53, 0.0  ;;  %v6110_v34 = vld [vmem:[#allocation29_spill] sm:$0xff] }
 0x1aa   :  { %v2038_v58 = vpop.f32.mrf.mxu1  ;;  %v3437_v17 = vld [vmem:[%s5907_s4 + $0x218] sm:$0xff]  ;;  %2364 = vmatpush.bf16.msra.mxu0 %v3429_v51 }
 0x1ab   :  { %6104 = vst [vmem:[#allocation31_spill] sm:$0xff] %v5438_v61  ;;  %v1058_v11 = vmax.f32 %v978_v60, 0.0  ;;  %v2039_v40 = vadd.f32 %v5242_v6, %v2038_v58  ;;  %2413 = vmatpush.bf16.msra.mxu1 %v3437_v17  ;;  %v5478_v51 = vmul.f32 %v5468_v23, %v1048_v46  ;;  %v6109_v61 = vld [vmem:[#allocation30_spill] sm:$0xff]  ;;  %v6117_v46 = vld [vmem:[#allocation45_spill] sm:$0xff] }
 0x1ad   :  { %v5453_v0 = vmul.f32 %v5444_v39, %v1058_v11  ;;  %6108 = vst [vmem:[#allocation19_spill] sm:$0xff] %v5478_v51 }
 0x1ae   :  { %v928_v41 = vpop.f32.mrf.mxu3 }
 0x1af   :  { %6106 = vst [vmem:[#allocation32_spill] sm:$0xff] %v5453_v0  ;;  %v929_v21 = vadd.f32 %v928_v41, %v5277_v37  ;;  %v6111_v0 = vpack.c.bf16 %v6109_v61, %v6110_v34 }
 0x1b0   :  { %v2087_v60 = vpop.f32.mrf.mxu2  ;;  %v980_v53 = vpop.f32.mrf.mxu0 }
 0x1b1   :  { %v5475_v58 = vadd.f32 %v2087_v60, %v2039_v40  ;;  %v1057_v41 = vmax.f32 %v929_v21, 0.0  ;;  %v981_v11 = vadd.f32 %v5228_v49, %v980_v53  ;;  %v6113_v40 = vld [vmem:[#allocation46_spill] sm:$0xff]  ;;  %v6114_v60 = vld [vmem:[#allocation44_spill] sm:$0xff] }
 0x1b2   :  { %v2041_v5 = vpop.f32.mrf.mxu1  ;;  %v6115_v21 = vpack.c.bf16 %v6113_v40, %v6114_v60  ;;  %v3420_v53 = vld [vmem:[%s5907_s4 + $0x190] sm:$0xff]  ;;  %v5513_v60 = vld [vmem:[%s5904_s1 + $0x238] sm:$0xff] }
 0x1b3   :  { %6107 = vst [vmem:[#allocation20_spill] sm:$0xff] %v5475_v58  ;;  %v5481_v17 = vmul.f32 %v5473_v27, %v1057_v41  ;;  %2138 = vmatmul.bf16.gmra.mxu3 %v6111_v0  ;;  %v6116_v58 = vld [vmem:[#allocation47_spill] sm:$0xff]  ;;  %v2042_v34 = vadd.f32 %v5242_v6, %v2041_v5  ;;  %v1067_v48 = vmax.f32 %v981_v11, 0.0 }
 0x1b4   :  { %v6118_v43 = vpack.c.bf16 %v6116_v58, %v6117_v46  ;;  %2316 = vmatpush.bf16.msra.mxu3 %v3420_v53  ;;  %v5537_v46 = vld [vmem:[%s5904_s1 + $0x1e8] sm:$0xff] }
 0x1b6   :  { %2187 = vmatmul.bf16.gmra.mxu0 %v6112_v50  ;;  %2236 = vmatmul.bf16.gmra.mxu1 %v6115_v21  ;;  %v931_v0 = vpop.f32.mrf.mxu3  ;;  %v5505_v50 = vld [vmem:[%s5904_s1 + $0x1f0] sm:$0xff] }
 0x1b7   :  { %2285 = vmatmul.bf16.gmra.mxu2 %v6118_v43  ;;  %v5516_v5 = vmul.f32 %v5505_v50, %v1067_v48  ;;  %v932_v11 = vadd.f32 %v931_v0, %v5277_v37 }
 0x1b8   :  { %v2090_v44 = vpop.f32.mrf.mxu2  ;;  %v982_v43 = vpop.f32.mrf.mxu0 }
 0x1b9   :  { %v5507_v58 = vadd.f32 %v2090_v44, %v2042_v34  ;;  %v983_v41 = vadd.f32 %v5228_v49, %v982_v43  ;;  %6120 = vst [vmem:[#allocation41_spill] sm:$0xff] %v5516_v5  ;;  %v3428_v34 = vld [vmem:[%s5907_s4 + $0x1d0] sm:$0xff]  ;;  %v1066_v61 = vmax.f32 %v932_v11, 0.0  ;;  %v6122_v5 = vld [vmem:[#allocation9_spill] sm:$0xff] }
 0x1ba   :  { %v2043_v40 = vpop.f32.mrf.mxu1  ;;  %v3436_v44 = vld [vmem:[%s5907_s4 + $0x210] sm:$0xff]  ;;  %2365 = vmatpush.bf16.msra.mxu0 %v3428_v34 }
 0x1bb   :  { %6119 = vst [vmem:[#allocation42_spill] sm:$0xff] %v5507_v58  ;;  %v1076_v21 = vmax.f32 %v983_v41, 0.0  ;;  %v2044_v48 = vadd.f32 %v5242_v6, %v2043_v40  ;;  %2414 = vmatpush.bf16.msra.mxu1 %v3436_v44  ;;  %v5548_v15 = vmul.f32 %v5537_v46, %v1066_v61  ;;  %v6127_v61 = vpack.c.bf16 %v4994_v63, %v4967_v24 }
 0x1bd   :  { %v5522_v53 = vmul.f32 %v5513_v60, %v1076_v21 }
 0x1be   :  { %v933_v43 = vpop.f32.mrf.mxu3 }
 0x1bf   :  { %6121 = vst [vmem:[#allocation39_spill] sm:$0xff] %v5522_v53  ;;  %v934_v0 = vadd.f32 %v933_v43, %v5277_v37  ;;  %v6123_v53 = vld [vmem:[#allocation7_spill] sm:$0xff] }
 0x1c0   :  { %v2092_v41 = vpop.f32.mrf.mxu2  ;;  %v985_v11 = vpop.f32.mrf.mxu0  ;;  %v6124_v51 = vpack.c.bf16 %v6122_v5, %v6123_v53  ;;  %v3419_v5 = vld [vmem:[%s5907_s4 + $0x188] sm:$0xff] }
 0x1c1   :  { %v5544_v40 = vadd.f32 %v2092_v41, %v2044_v48  ;;  %v1075_v43 = vmax.f32 %v934_v0, 0.0  ;;  %v986_v34 = vadd.f32 %v5228_v49, %v985_v11  ;;  %v6125_v48 = vpack.c.bf16 %v5014_v59, %v4980_v26  ;;  %2317 = vmatpush.bf16.msra.mxu3 %v3419_v5 }
 0x1c2   :  { %v2046_v44 = vpop.f32.mrf.mxu1  ;;  %v6126_v0 = vpack.c.bf16 %v4991_v7, %v4962_v4 }
 0x1c3   :  { %v5551_v21 = vmul.f32 %v5542_v56, %v1075_v43  ;;  %v1085_v58 = vmax.f32 %v986_v34, 0.0  ;;  %2143 = vmatmul.bf16.gmra.mxu3 %v6124_v51  ;;  %v2047_v59 = vadd.f32 %v5242_v6, %v2046_v44 }
 0x1c5   :  { %v5566_v41 = vmul.f32 %v5288_v18, %v1085_v58  ;;  %v1399_v51 = vpack.c.bf16 %v5551_v21, %v5548_v15 }
 0x1c6   :  { %2192 = vmatmul.bf16.gmra.mxu0 %v6125_v48  ;;  %2241 = vmatmul.bf16.gmra.mxu1 %v6126_v0  ;;  %v936_v26 = vpop.f32.mrf.mxu3  ;;  %v3427_v48 = vld [vmem:[%s5907_s4 + $0x1c8] sm:$0xff] }
 0x1c7   :  { %2290 = vmatmul.bf16.gmra.mxu2 %v6127_v61  ;;  %v937_v4 = vadd.f32 %v936_v26, %v5277_v37  ;;  %v3435_v0 = vld [vmem:[%s5907_s4 + $0x208] sm:$0xff]  ;;  %2366 = vmatpush.bf16.msra.mxu0 %v3427_v48  ;;  %v6131_v48 = vpack.c.bf16 %v5094_v45, %v5055_v22 }
 0x1c8   :  { %v987_v24 = vpop.f32.mrf.mxu0  ;;  %2415 = vmatpush.bf16.msra.mxu1 %v3435_v0  ;;  %v6132_v0 = vpack.c.bf16 %v5066_v32, %v5032_v10 }
 0x1c9   :  { %v2095_v7 = vpop.f32.mrf.mxu2  ;;  %v1084_v63 = vmax.f32 %v937_v4, 0.0  ;;  %v988_v18 = vadd.f32 %v5228_v49, %v987_v24 }
 0x1ca   :  { %v5575_v53 = vadd.f32 %v2095_v7, %v2047_v59  ;;  %v5578_v58 = vpop.f32.mrf.mxu1 }
 0x1cb   :  { %v5581_v11 = vmul.f32 %v5324_v2, %v1084_v63  ;;  %v1094_v43 = vmax.f32 %v988_v18, 0.0  ;;  %v6128_v18 = vld [vmem:[#allocation12_spill] sm:$0xff] }
 0x1cd   :  { %v5586_v44 = vmul.f32 %v5296_v16, %v1094_v43  ;;  %v6129_v43 = vld [vmem:[#allocation11_spill] sm:$0xff] }
 0x1ce   :  { %v938_v61 = vpop.f32.mrf.mxu3  ;;  %v6130_v34 = vpack.c.bf16 %v6128_v18, %v6129_v43  ;;  %v3426_v43 = vld [vmem:[%s5907_s4 + $0x1c0] sm:$0xff] }
 0x1cf   :  { %v939_v5 = vadd.f32 %v938_v61, %v5277_v37  ;;  %v1409_v59 = vpack.c.bf16 %v5586_v44, %v5566_v41  ;;  %v6133_v61 = vpack.c.bf16 %v5069_v25, %v5037_v1  ;;  %2367 = vmatpush.bf16.msra.mxu0 %v3426_v43  ;;  %v6137_v43 = vpack.c.bf16 %v5135_v19, %v5109_v29 }
 0x1d0   :  { %v990_v16 = vpop.f32.mrf.mxu0 }
 0x1d1   :  { %v5595_v2 = vpop.f32.mrf.mxu2  ;;  %v1093_v26 = vmax.f32 %v939_v5, 0.0  ;;  %v991_v4 = vadd.f32 %v5228_v49, %v990_v16  ;;  %v3418_v5 = vld [vmem:[%s5907_s4 + $0x180] sm:$0xff] }
 0x1d2   :  { %v2051_v7 = vpop.f32.mrf.mxu1  ;;  %2318 = vmatpush.bf16.msra.mxu3 %v3418_v5 }
 0x1d3   :  { %v5601_v24 = vmul.f32 %v5329_v20, %v1093_v26  ;;  %v1103_v63 = vmax.f32 %v991_v4, 0.0  ;;  %2148 = vmatmul.bf16.gmra.mxu3 %v6130_v34  ;;  %v2052_v22 = vadd.f32 %v5242_v6, %v2051_v7 }
 0x1d5   :  { %v5616_v20 = vmul.f32 %v5367_v35, %v1103_v63  ;;  %v1408_v34 = vpack.c.bf16 %v5601_v24, %v5581_v11  ;;  %v3444_v11 = vld [vmem:[%s5909_s6 + $0x10] sm:$0xff] }
 0x1d6   :  { %2197 = vmatmul.bf16.gmra.mxu0 %v6131_v48  ;;  %2246 = vmatmul.bf16.gmra.mxu1 %v6132_v0  ;;  %v941_v45 = vpop.f32.mrf.mxu3  ;;  %v3434_v48 = vld [vmem:[%s5907_s4 + $0x200] sm:$0xff] }
 0x1d7   :  { %2295 = vmatmul.bf16.gmra.mxu2 %v6133_v61  ;;  %v942_v10 = vadd.f32 %v941_v45, %v5277_v37  ;;  %2416 = vmatpush.bf16.msra.mxu1 %v3434_v48  ;;  %v6138_v48 = vpack.c.bf16 %v5138_v47, %v5117_v30 }
 0x1d8   :  { %v992_v1 = vpop.f32.mrf.mxu0 }
 0x1d9   :  { %v2100_v32 = vpop.f32.mrf.mxu2  ;;  %v1102_v25 = vmax.f32 %v942_v10, 0.0  ;;  %v993_v35 = vadd.f32 %v5228_v49, %v992_v1 }
 0x1da   :  { %v5625_v16 = vadd.f32 %v2100_v32, %v2052_v22  ;;  %v5628_v26 = vpop.f32.mrf.mxu1 }
 0x1db   :  { %v5631_v4 = vmul.f32 %v5399_v31, %v1102_v25  ;;  %v1112_v63 = vmax.f32 %v993_v35, 0.0  ;;  %v6134_v25 = vld [vmem:[#allocation15_spill] sm:$0xff] }
 0x1dc   :  { %v6135_v35 = vpack.c.bf16 %v4498_v57, %v6134_v25 }
 0x1dd   :  { %v5636_v18 = vmul.f32 %v5375_v14, %v1112_v63  ;;  %v6136_v63 = vpack.c.bf16 %v5164_v12, %v5129_v38 }
 0x1de   :  { %v943_v0 = vpop.f32.mrf.mxu3 }
 0x1df   :  { %v944_v61 = vadd.f32 %v943_v0, %v5277_v37  ;;  %v1418_v5 = vpack.c.bf16 %v5636_v18, %v5616_v20 }
 0x1e0   :  { %v995_v14 = vpop.f32.mrf.mxu0 }
 0x1e1   :  { %v5645_v31 = vpop.f32.mrf.mxu2  ;;  %v1111_v22 = vmax.f32 %v944_v61, 0.0  ;;  %v996_v45 = vadd.f32 %v5228_v49, %v995_v14 }
 0x1e3   :  { %v2056_v10 = vpop.f32.mrf.mxu1  ;;  %v5651_v32 = vmul.f32 %v5404_v28, %v1111_v22  ;;  %v1121_v1 = vmax.f32 %v996_v45, 0.0  ;;  %2153 = vmatmul.bf16.gmra.mxu3 %v6135_v35 }
 0x1e4   :  { %v2057_v57 = vadd.f32 %v5242_v6, %v2056_v10 }
 0x1e5   :  { %v5666_v28 = vmul.f32 %v5436_v9, %v1121_v1  ;;  %v1417_v0 = vpack.c.bf16 %v5651_v32, %v5631_v4  ;;  %v3443_v4 = vld [vmem:[%s5909_s6 + $0x8] sm:$0xff] }
 0x1e6   :  { %2202 = vmatmul.bf16.gmra.mxu0 %v6136_v63  ;;  %2251 = vmatmul.bf16.gmra.mxu1 %v6137_v43  ;;  %v946_v61 = vpop.f32.mrf.mxu3 }
 0x1e7   :  { %2300 = vmatmul.bf16.gmra.mxu2 %v6138_v48  ;;  %v947_v38 = vadd.f32 %v946_v61, %v5277_v37 }
 0x1e8   :  { %v997_v29 = vpop.f32.mrf.mxu0 }
 0x1e9   :  { %v2105_v12 = vpop.f32.mrf.mxu2  ;;  %v1120_v19 = vmax.f32 %v947_v38, 0.0  ;;  %v998_v22 = vadd.f32 %v5228_v49, %v997_v29  ;;  %v6140_v38 = vpack.c.bf16 %v5250_v13, %v5205_v55 }
 0x1ea   :  { %v5672_v14 = vadd.f32 %v2105_v12, %v2057_v57  ;;  %v6141_v12 = vld [vmem:[#allocation13_spill] sm:$0xff] }
 0x1eb   :  { %v5675_v30 = vpop.f32.mrf.mxu1  ;;  %v5678_v47 = vmul.f32 %v5468_v23, %v1120_v19  ;;  %v1130_v9 = vmax.f32 %v998_v22, 0.0  ;;  %v6142_v29 = vpack.c.bf16 %v5213_v62, %v6141_v12  ;;  %v6143_v19 = vld [vmem:[#allocation52_spill] sm:$0xff]  ;;  %v6144_v22 = vld [vmem:[#allocation49_spill] sm:$0xff] }
 0x1ed   :  { %v5681_v45 = vmul.f32 %v5444_v39, %v1130_v9  ;;  %v6139_v39 = vpack.c.bf16 %v4575_v3, %v4530_v54  ;;  %v6145_v9 = vpack.c.bf16 %v6143_v19, %v6144_v22 }
 0x1ee   :  { %v948_v10 = vpop.f32.mrf.mxu3 }
 0x1ef   :  { %v949_v1 = vadd.f32 %v948_v10, %v5277_v37 }
 0x1f0   :  { %v1000_v63 = vpop.f32.mrf.mxu0 }
 0x1f1   :  { %v5684_v25 = vpop.f32.mrf.mxu2  ;;  %v1129_v43 = vmax.f32 %v949_v1, 0.0  ;;  %v1001_v48 = vadd.f32 %v5228_v49, %v1000_v63 }
 0x1f3   :  { %v2061_v57 = vpop.f32.mrf.mxu1  ;;  %v5690_v23 = vmul.f32 %v5473_v27, %v1129_v43  ;;  %v1139_v61 = vmax.f32 %v1001_v48, 0.0  ;;  %2158 = vmatmul.bf16.gmra.mxu3 %v6139_v39 }
 0x1f4   :  { %v2062_v54 = vadd.f32 %v5242_v6, %v2061_v57  ;;  %v3449_v57 = vld [vmem:[%s5909_s6 + $0x38] sm:$0xff] }
 0x1f5   :  { %v5705_v27 = vmul.f32 %v5505_v50, %v1139_v61  ;;  %v1426_v10 = vpack.c.bf16 %v5690_v23, %v5678_v47  ;;  %2546 = vmatpush.bf16.msra.mxu2 %v3449_v57  ;;  %v3442_v47 = vld [vmem:[%s5909_s6] sm:$0xff] }
 0x1f6   :  { %2207 = vmatmul.bf16.gmra.mxu0 %v6140_v38  ;;  %2256 = vmatmul.bf16.gmra.mxu1 %v6142_v29  ;;  %v951_v3 = vpop.f32.mrf.mxu3 }
 0x1f7   :  { %2305 = vmatmul.bf16.gmra.mxu2 %v6145_v9  ;;  %v952_v55 = vadd.f32 %v951_v3, %v5277_v37  ;;  %v6146_v9 = vld [vmem:[#allocation28_spill] sm:$0xff] }
 0x1f8   :  { %v1002_v62 = vpop.f32.mrf.mxu0  ;;  %v6149_v3 = vld [vmem:[#allocation24_spill] sm:$0xff] }
 0x1f9   :  { %v2110_v13 = vpop.f32.mrf.mxu2  ;;  %v1138_v63 = vmax.f32 %v952_v55, 0.0  ;;  %v1003_v43 = vadd.f32 %v5228_v49, %v1002_v62  ;;  %v6150_v55 = vpack.c.bf16 %v5337_v36, %v6149_v3  ;;  %v3448_v36 = vld [vmem:[%s5909_s6 + $0x30] sm:$0xff] }
 0x1fa   :  { %v5711_v1 = vadd.f32 %v2110_v13, %v2062_v54  ;;  %v6151_v13 = vld [vmem:[#allocation23_spill] sm:$0xff]  ;;  %2547 = vmatpush.bf16.msra.mxu2 %v3448_v36  ;;  %v6163_v49 = vld [vmem:[#allocation18_spill] sm:$0xff] }
 0x1fb   :  { %v5714_v48 = vpop.f32.mrf.mxu1  ;;  %v5717_v50 = vmul.f32 %v5537_v46, %v1138_v63  ;;  %v1148_v61 = vmax.f32 %v1003_v43, 0.0 }
 0x1fd   :  { %v5720_v39 = vmul.f32 %v5513_v60, %v1148_v61  ;;  %v6147_v60 = vld [vmem:[#allocation25_spill] sm:$0xff]  ;;  %v6154_v61 = vld [vmem:[#allocation27_spill] sm:$0xff] }
 0x1fe   :  { %v953_v38 = vpop.f32.mrf.mxu3  ;;  %v6148_v54 = vpack.c.bf16 %v6146_v9, %v6147_v60  ;;  %v6155_v60 = vld [vmem:[#allocation21_spill] sm:$0xff] }
 0x1ff   :  { %v954_v12 = vadd.f32 %v953_v38, %v5277_v37  ;;  %v6152_v37 = vld [vmem:[#allocation26_spill] sm:$0xff] }
 0x200   :  { %v6153_v62 = vpack.c.bf16 %v6151_v13, %v6152_v37 }
 0x201   :  { %v1147_v19 = vmax.f32 %v954_v12, 0.0 }
 0x203   :  { %v2173_v29 = vpop.f32.mrf.mxu0  ;;  %v2222_v22 = vpop.f32.mrf.mxu1  ;;  %v5729_v46 = vmul.f32 %v5542_v56, %v1147_v19  ;;  %2319 = vmatmul.bf16.vlgmr.msra.gmra.mxu3 %v6148_v54 }
 0x206   :  { %2368 = vmatmul.bf16.vlgmr.msra.gmra.mxu0 %v6150_v55  ;;  %2417 = vmatmul.bf16.vlgmr.msra.gmra.mxu1 %v6153_v62  ;;  %v2124_v43 = vpop.f32.mrf.mxu3  ;;  %v6156_v62 = vld [vmem:[#allocation51_spill] sm:$0xff] }
 0x207   :  { %v2125_v57 = vadd.f32 %v2124_v43, %v6154_v61  ;;  %v6157_v43 = vld [vmem:[#allocation50_spill] sm:$0xff] }
 0x208   :  { %v6158_v61 = vpack.c.bf16 %v6156_v62, %v6157_v43  ;;  %v6166_v43 = vld [vmem:[#allocation36_spill] sm:$0xff] }
 0x209   :  { %v2174_v38 = vadd.f32 %v2173_v29, %v2125_v57  ;;  %v6159_v29 = vld [vmem:[#allocation33_spill] sm:$0xff] }
 0x20b   :  { %v2175_v56 = vpop.f32.mrf.mxu0  ;;  %v2224_v12 = vpop.f32.mrf.mxu1  ;;  %v5743_v19 = vadd.f32 %v2222_v22, %v2174_v38  ;;  %v6160_v22 = vld [vmem:[#allocation35_spill] sm:$0xff]  ;;  %v6162_v38 = vld [vmem:[#allocation17_spill] sm:$0xff] }
 0x20c   :  { %v6161_v57 = vpack.c.bf16 %v6159_v29, %v6160_v22  ;;  %v6164_v63 = vpack.c.bf16 %v6162_v38, %v6163_v49 }
 0x20e   :  { %v2126_v9 = vpop.f32.mrf.mxu3 }
 0x20f   :  { %v2127_v54 = vadd.f32 %v2126_v9, %v6155_v60  ;;  %v6165_v9 = vld [vmem:[#allocation48_spill] sm:$0xff] }
 0x211   :  { %v2176_v55 = vadd.f32 %v2175_v56, %v2127_v54 }
 0x213   :  { %v2178_v3 = vpop.f32.mrf.mxu0  ;;  %v2227_v13 = vpop.f32.mrf.mxu1  ;;  %v5749_v37 = vadd.f32 %v2224_v12, %v2176_v55  ;;  %2324 = vmatmul.bf16.gmra.mxu3 %v6158_v61  ;;  %v3447_v55 = vld [vmem:[%s5909_s6 + $0x28] sm:$0xff] }
 0x214   :  { %2548 = vmatpush.bf16.msra.mxu2 %v3447_v55 }
 0x216   :  { %2373 = vmatmul.bf16.gmra.mxu0 %v6161_v57  ;;  %2422 = vmatmul.bf16.gmra.mxu1 %v6164_v63  ;;  %v2129_v7 = vpop.f32.mrf.mxu3  ;;  %v6167_v57 = vld [vmem:[#allocation14_spill] sm:$0xff] }
 0x217   :  { %v2130_v36 = vadd.f32 %v2129_v7, %v6165_v9  ;;  %v6168_v7 = vld [vmem:[#allocation16_spill] sm:$0xff] }
 0x218   :  { %v6169_v38 = vpack.c.bf16 %v6167_v57, %v6168_v7  ;;  %v6172_v9 = vld [vmem:[#allocation32_spill] sm:$0xff] }
 0x219   :  { %v2179_v56 = vadd.f32 %v2178_v3, %v2130_v36  ;;  %v6170_v3 = vld [vmem:[#allocation19_spill] sm:$0xff]  ;;  %v6173_v36 = vld [vmem:[#allocation34_spill] sm:$0xff]  ;;  %v6176_v7 = vld [vmem:[#allocation20_spill] sm:$0xff] }
 0x21b   :  { %v2180_v60 = vpop.f32.mrf.mxu0  ;;  %v2229_v54 = vpop.f32.mrf.mxu1  ;;  %v5761_v12 = vadd.f32 %v2227_v13, %v2179_v56  ;;  %v6171_v13 = vpack.c.bf16 %v5481_v17, %v6170_v3  ;;  %v6174_v56 = vpack.c.bf16 %v6172_v9, %v6173_v36  ;;  %v6177_v36 = vld [vmem:[#allocation43_spill] sm:$0xff] }
 0x21e   :  { %v2131_v62 = vpop.f32.mrf.mxu3 }
 0x21f   :  { %v2132_v61 = vadd.f32 %v2131_v62, %v6166_v43  ;;  %v6175_v62 = vld [vmem:[#allocation31_spill] sm:$0xff] }
 0x221   :  { %v2181_v22 = vadd.f32 %v2180_v60, %v2132_v61 }
 0x223   :  { %v2183_v29 = vpop.f32.mrf.mxu0  ;;  %v2232_v49 = vpop.f32.mrf.mxu1  ;;  %v5767_v63 = vadd.f32 %v2229_v54, %v2181_v22  ;;  %2329 = vmatmul.bf16.gmra.mxu3 %v6169_v38  ;;  %v3446_v22 = vld [vmem:[%s5909_s6 + $0x20] sm:$0xff] }
 0x224   :  { %2549 = vmatpush.bf16.msra.mxu2 %v3446_v22 }
 0x226   :  { %2378 = vmatmul.bf16.gmra.mxu0 %v6171_v13  ;;  %2427 = vmatmul.bf16.gmra.mxu1 %v6174_v56  ;;  %v2134_v35 = vpop.f32.mrf.mxu3 }
 0x227   :  { %v2135_v55 = vadd.f32 %v2134_v35, %v6175_v62  ;;  %v6178_v35 = vld [vmem:[#allocation22_spill] sm:$0xff] }
 0x228   :  { %v6179_v56 = vpack.c.bf16 %v6177_v36, %v6178_v35 }
 0x229   :  { %v2184_v60 = vadd.f32 %v2183_v29, %v2135_v55  ;;  %v6180_v29 = vld [vmem:[#allocation39_spill] sm:$0xff] }
 0x22b   :  { %v2185_v43 = vpop.f32.mrf.mxu0  ;;  %v2234_v61 = vpop.f32.mrf.mxu1  ;;  %v5779_v54 = vadd.f32 %v2232_v49, %v2184_v60  ;;  %v6181_v49 = vld [vmem:[#allocation41_spill] sm:$0xff]  ;;  %v6183_v60 = vld [vmem:[#allocation42_spill] sm:$0xff] }
 0x22c   :  { %v6182_v62 = vpack.c.bf16 %v6180_v29, %v6181_v49  ;;  %v6185_v29 = vld [vmem:[#allocation6_spill] sm:$0xff] }
 0x22e   :  { %v2136_v57 = vpop.f32.mrf.mxu3 }
 0x22f   :  { %v2137_v17 = vadd.f32 %v2136_v57, %v6176_v7 }
 0x231   :  { %v2186_v3 = vadd.f32 %v2185_v43, %v2137_v17  ;;  %v3445_v17 = vld [vmem:[%s5909_s6 + $0x18] sm:$0xff] }
 0x232   :  { %2550 = vmatpush.bf16.msra.mxu2 %v3445_v17 }
 0x233   :  { %v2188_v38 = vpop.f32.mrf.mxu0  ;;  %v2237_v13 = vpop.f32.mrf.mxu1  ;;  %v5785_v9 = vadd.f32 %v2234_v61, %v2186_v3  ;;  %2334 = vmatmul.bf16.gmra.mxu3 %v6179_v56  ;;  %v6184_v56 = vld [vmem:[#allocation8_spill] sm:$0xff] }
 0x234   :  { %v6186_v49 = vpack.c.bf16 %v6184_v56, %v6185_v29  ;;  %v2112_v56 = vpop.f32.mrf.mxu2 }
 0x236   :  { %2383 = vmatmul.bf16.gmra.mxu0 %v1399_v51  ;;  %2432 = vmatmul.bf16.gmra.mxu1 %v6182_v62  ;;  %v2139_v55 = vpop.f32.mrf.mxu3 }
 0x237   :  { %v2140_v22 = vadd.f32 %v2139_v55, %v6183_v60  ;;  %v2049_v60 = vadd.f32 %v5242_v6, %v5578_v58  ;;  %2551 = vmatpush.bf16.msra.mxu2 %v3444_v11 }
 0x239   :  { %v2189_v43 = vadd.f32 %v2188_v38, %v2140_v22 }
 0x23b   :  { %v2190_v57 = vpop.f32.mrf.mxu0  ;;  %v2239_v7 = vpop.f32.mrf.mxu1  ;;  %v5797_v61 = vadd.f32 %v2237_v13, %v2189_v43  ;;  %v6187_v43 = vld [vmem:[#allocation10_spill] sm:$0xff]  ;;  %2552 = vmatpush.bf16.msra.mxu2 %v3443_v4 }
 0x23e   :  { %v2141_v3 = vpop.f32.mrf.mxu3 }
 0x23f   :  { %v2142_v15 = vadd.f32 %v2141_v3, %v5544_v40  ;;  %2553 = vmatpush.bf16.msra.mxu2 %v3442_v47 }
 0x241   :  { %v2191_v51 = vadd.f32 %v2190_v57, %v2142_v15  ;;  %v2098_v57 = vadd.f32 %v5595_v2, %v2049_v60  ;;  %v2059_v60 = vadd.f32 %v5242_v6, %v5675_v30  ;;  %v6192_v30 = vpack.c.bf16 %v5260_v52, %v5208_v42 }
 0x243   :  { %v2193_v21 = vpop.f32.mrf.mxu0  ;;  %v2242_v36 = vpop.f32.mrf.mxu1  ;;  %v5803_v35 = vadd.f32 %v2239_v7, %v2191_v51  ;;  %2339 = vmatmul.bf16.gmra.mxu3 %v6186_v49  ;;  %v6188_v7 = vld [vmem:[#allocation5_spill] sm:$0xff]  ;;  %v2054_v51 = vadd.f32 %v5242_v6, %v5628_v26  ;;  %v6190_v26 = vpack.c.bf16 %v5170_v8, %v5132_v33  ;;  %v2108_v8 = vadd.f32 %v5684_v25, %v2059_v60 }
 0x244   :  { %v6189_v17 = vpack.c.bf16 %v6187_v43, %v6188_v7  ;;  %v2271_v49 = vpop.f32.mrf.mxu2  ;;  %v6193_v25 = vpack.c.bf16 %v5729_v46, %v5717_v50 }
 0x245   :  { %v2103_v29 = vadd.f32 %v5645_v31, %v2054_v51  ;;  %v6191_v31 = vpack.c.bf16 %v5681_v45, %v5666_v28 }
 0x246   :  { %2388 = vmatmul.bf16.gmra.mxu0 %v1408_v34  ;;  %2437 = vmatmul.bf16.gmra.mxu1 %v1409_v59  ;;  %v2144_v38 = vpop.f32.mrf.mxu3 }
 0x247   :  { %v2145_v40 = vadd.f32 %v2144_v38, %v5575_v53 }
 0x249   :  { %v2194_v62 = vadd.f32 %v2193_v21, %v2145_v40 }
 0x24b   :  { %v2195_v13 = vpop.f32.mrf.mxu0  ;;  %v2244_v55 = vpop.f32.mrf.mxu1  ;;  %v5817_v22 = vadd.f32 %v2242_v36, %v2194_v62 }
 0x24c   :  { %v2273_v23 = vpop.f32.mrf.mxu2 }
 0x24d   :  { %v2274_v4 = vadd.f32 %v2273_v23, %v5749_v37 }
 0x24e   :  { %v2146_v24 = vpop.f32.mrf.mxu3 }
 0x24f   :  { %v2147_v41 = vadd.f32 %v2146_v24, %v2098_v57  ;;  %v6194_v24 = vpack.c.bf16 %v5720_v39, %v5705_v27 }
 0x251   :  { %v2196_v59 = vadd.f32 %v2195_v13, %v2147_v41 }
 0x253   :  { %v2198_v44 = vpop.f32.mrf.mxu0  ;;  %v2247_v53 = vpop.f32.mrf.mxu1  ;;  %v5823_v34 = vadd.f32 %v2244_v55, %v2196_v59  ;;  %2344 = vmatmul.bf16.gmra.mxu3 %v6189_v17  ;;  %v2064_v17 = vadd.f32 %v5242_v6, %v5714_v48 }
 0x254   :  { %v2276_v7 = vpop.f32.mrf.mxu2 }
 0x255   :  { %v2113_v42 = vadd.f32 %v2112_v56, %v2064_v17 }
 0x256   :  { %2393 = vmatmul.bf16.gmra.mxu0 %v1417_v0  ;;  %2442 = vmatmul.bf16.gmra.mxu1 %v1418_v5  ;;  %v2149_v58 = vpop.f32.mrf.mxu3 }
 0x257   :  { %v2150_v2 = vadd.f32 %v2149_v58, %v5625_v16 }
 0x259   :  { %v2199_v15 = vadd.f32 %v2198_v44, %v2150_v2 }
 0x25b   :  { %v2200_v3 = vpop.f32.mrf.mxu0  ;;  %v2249_v21 = vpop.f32.mrf.mxu1  ;;  %v5837_v36 = vadd.f32 %v2247_v53, %v2199_v15 }
 0x25c   :  { %v2278_v39 = vpop.f32.mrf.mxu2 }
 0x25d   :  { %v2279_v37 = vadd.f32 %v2278_v39, %v5767_v63 }
 0x25e   :  { %v2151_v20 = vpop.f32.mrf.mxu3 }
 0x25f   :  { %v2152_v18 = vadd.f32 %v2151_v20, %v2103_v29 }
 0x261   :  { %v2201_v16 = vadd.f32 %v2200_v3, %v2152_v18 }
 0x263   :  { %v2203_v5 = vpop.f32.mrf.mxu0  ;;  %v2252_v32 = vpop.f32.mrf.mxu1  ;;  %v5843_v0 = vadd.f32 %v2249_v21, %v2201_v16  ;;  %2349 = vmatmul.bf16.gmra.mxu3 %v6190_v26 }
 0x264   :  { %v2281_v48 = vpop.f32.mrf.mxu2 }
 0x266   :  { %2398 = vmatmul.bf16.gmra.mxu0 %v1426_v10  ;;  %2447 = vmatmul.bf16.gmra.mxu1 %v6191_v31  ;;  %v2154_v38 = vpop.f32.mrf.mxu3 }
 0x267   :  { %v2155_v40 = vadd.f32 %v2154_v38, %v5672_v14 }
 0x269   :  { %v2204_v62 = vadd.f32 %v2203_v5, %v2155_v40 }
 0x26b   :  { %v2205_v13 = vpop.f32.mrf.mxu0  ;;  %v2254_v55 = vpop.f32.mrf.mxu1  ;;  %v5857_v33 = vadd.f32 %v2252_v32, %v2204_v62 }
 0x26e   :  { %v2156_v28 = vpop.f32.mrf.mxu3 }
 0x26f   :  { %v2157_v45 = vadd.f32 %v2156_v28, %v2108_v8 }
 0x271   :  { %v2206_v14 = vadd.f32 %v2205_v13, %v2157_v45  ;;  %v2277_v13 = vadd.f32 %v2276_v7, %v5761_v12 }
 0x273   :  { %v2208_v10 = vpop.f32.mrf.mxu0  ;;  %v2257_v57 = vpop.f32.mrf.mxu1  ;;  %v5863_v11 = vadd.f32 %v2254_v55, %v2206_v14  ;;  %2354 = vmatmul.bf16.gmra.mxu3 %v6192_v30 }
 0x276   :  { %2403 = vmatmul.bf16.gmra.mxu0 %v6193_v25  ;;  %2452 = vmatmul.bf16.gmra.mxu1 %v6194_v24  ;;  %v2159_v41 = vpop.f32.mrf.mxu3 }
 0x277   :  { %v2160_v44 = vadd.f32 %v2159_v41, %v5711_v1  ;;  %v2272_v1 = vadd.f32 %v2271_v49, %v5743_v19  ;;  %v2283_v49 = vpop.f32.mrf.mxu2  ;;  %v2282_v41 = vadd.f32 %v2281_v48, %v5779_v54 }
 0x278   :  { %v2284_v7 = vadd.f32 %v2283_v49, %v5785_v9 }
 0x279   :  { %v2209_v53 = vadd.f32 %v2208_v10, %v2160_v44 }
 0x27b   :  { %v2210_v59 = vpop.f32.mrf.mxu0  ;;  %v2259_v43 = vpop.f32.mrf.mxu1  ;;  %v5877_v52 = vadd.f32 %v2257_v57, %v2209_v53 }
 0x27e   :  { %v2161_v58 = vpop.f32.mrf.mxu3 }
 0x27f   :  { %v2162_v50 = vadd.f32 %v2161_v58, %v2113_v42  ;;  %v2286_v57 = vpop.f32.mrf.mxu2 }
 0x281   :  { %v2211_v2 = vadd.f32 %v2210_v59, %v2162_v50 }
 0x283   :  { %v2369_v46 = vpop.f32.mrf.mxu0  ;;  %v2418_v3 = vpop.f32.mrf.mxu1  ;;  %v5879_v27 = vadd.f32 %v2259_v43, %v2211_v2 }
 0x286   :  { %v2320_v15 = vpop.f32.mrf.mxu3 }
 0x287   :  { %v2321_v51 = vadd.f32 %v2320_v15, %v2272_v1  ;;  %v2288_v63 = vpop.f32.mrf.mxu2 }
 0x288   :  { %v2289_v9 = vadd.f32 %v2288_v63, %v5803_v35 }
 0x289   :  { %v2370_v6 = vadd.f32 %v2369_v46, %v2321_v51  ;;  %v2287_v51 = vadd.f32 %v2286_v57, %v5797_v61 }
 0x28b   :  { %v2371_v21 = vpop.f32.mrf.mxu0  ;;  %v2420_v29 = vpop.f32.mrf.mxu1  ;;  %v2419_v5 = vadd.f32 %v2418_v3, %v2370_v6 }
 0x28d   :  { %v2458_v31 = vmax.f32 %v2419_v5, 0.0 }
 0x28e   :  { %v2322_v20 = vpop.f32.mrf.mxu3 }
 0x28f   :  { %v2323_v56 = vadd.f32 %v2322_v20, %v2274_v4 }
 0x291   :  { %v2372_v16 = vadd.f32 %v2371_v21, %v2323_v56  ;;  %v2291_v21 = vpop.f32.mrf.mxu2 }
 0x292   :  { %v2292_v61 = vadd.f32 %v2291_v21, %v5817_v22 }
 0x293   :  { %v2374_v18 = vpop.f32.mrf.mxu0  ;;  %v2423_v32 = vpop.f32.mrf.mxu1  ;;  %v2421_v26 = vadd.f32 %v2420_v29, %v2372_v16 }
 0x295   :  { %v2459_v38 = vmax.f32 %v2421_v26, 0.0 }
 0x296   :  { %v2325_v40 = vpop.f32.mrf.mxu3 }
 0x297   :  { %v2474_v19 = vpack.c.bf16 %v2459_v38, %v2458_v31  ;;  %v2326_v55 = vadd.f32 %v2325_v40, %v2277_v13 }
 0x299   :  { %2554 = vmatmul.bf16.vlgmr.msra.gmra.mxu2 %v2474_v19  ;;  %v2375_v8 = vadd.f32 %v2374_v18, %v2326_v55  ;;  %v2293_v5 = vpop.f32.mrf.mxu2 }
 0x29b   :  { %v2376_v62 = vpop.f32.mrf.mxu0  ;;  %v2425_v60 = vpop.f32.mrf.mxu1  ;;  %v2424_v23 = vadd.f32 %v2423_v32, %v2375_v8 }
 0x29d   :  { %v2460_v25 = vmax.f32 %v2424_v23, 0.0 }
 0x29e   :  { %v2327_v47 = vpop.f32.mrf.mxu3 }
 0x29f   :  { %v2328_v28 = vadd.f32 %v2327_v47, %v2279_v37  ;;  %v2294_v37 = vadd.f32 %v2293_v5, %v5823_v34 }
 0x2a1   :  { %v2377_v10 = vadd.f32 %v2376_v62, %v2328_v28  ;;  %v2296_v35 = vpop.f32.mrf.mxu2 }
 0x2a3   :  { %v2379_v45 = vpop.f32.mrf.mxu0  ;;  %v2428_v14 = vpop.f32.mrf.mxu1  ;;  %v2426_v30 = vadd.f32 %v2425_v60, %v2377_v10 }
 0x2a5   :  { %v2461_v24 = vmax.f32 %v2426_v30, 0.0 }
 0x2a6   :  { %v2330_v12 = vpop.f32.mrf.mxu3 }
 0x2a7   :  { %v2475_v44 = vpack.c.bf16 %v2461_v24, %v2460_v25  ;;  %v2331_v53 = vadd.f32 %v2330_v12, %v2282_v41  ;;  %v2297_v12 = vadd.f32 %v2296_v35, %v5837_v36 }
 0x2a9   :  { %2559 = vmatmul.bf16.gmra.mxu2 %v2475_v44  ;;  %v2380_v17 = vadd.f32 %v2379_v45, %v2331_v53  ;;  %v2298_v30 = vpop.f32.mrf.mxu2 }
 0x2aa   :  { %v2299_v34 = vadd.f32 %v2298_v30, %v5843_v0 }
 0x2ab   :  { %v2381_v59 = vpop.f32.mrf.mxu0  ;;  %v2430_v43 = vpop.f32.mrf.mxu1  ;;  %v2429_v46 = vadd.f32 %v2428_v14, %v2380_v17 }
 0x2ad   :  { %v2462_v15 = vmax.f32 %v2429_v46, 0.0 }
 0x2ae   :  { %v2332_v42 = vpop.f32.mrf.mxu3 }
 0x2af   :  { %v2333_v58 = vadd.f32 %v2332_v42, %v2284_v7 }
 0x2b1   :  { %v2382_v2 = vadd.f32 %v2381_v59, %v2333_v58  ;;  %v2301_v63 = vpop.f32.mrf.mxu2 }
 0x2b2   :  { %v2302_v36 = vadd.f32 %v2301_v63, %v5857_v33 }
 0x2b3   :  { %v2384_v50 = vpop.f32.mrf.mxu0  ;;  %v2433_v3 = vpop.f32.mrf.mxu1  ;;  %v2431_v39 = vadd.f32 %v2430_v43, %v2382_v2 }
 0x2b5   :  { %v2463_v1 = vmax.f32 %v2431_v39, 0.0 }
 0x2b6   :  { %v2335_v54 = vpop.f32.mrf.mxu3 }
 0x2b7   :  { %v2476_v29 = vpack.c.bf16 %v2463_v1, %v2462_v15  ;;  %v2336_v6 = vadd.f32 %v2335_v54, %v2287_v51 }
 0x2b9   :  { %2564 = vmatmul.bf16.gmra.mxu2 %v2476_v29  ;;  %v2385_v20 = vadd.f32 %v2384_v50, %v2336_v6  ;;  %v2303_v21 = vpop.f32.mrf.mxu2 }
 0x2ba   :  { %v2304_v0 = vadd.f32 %v2303_v21, %v5863_v11 }
 0x2bb   :  { %v2386_v4 = vpop.f32.mrf.mxu0  ;;  %v2435_v48 = vpop.f32.mrf.mxu1  ;;  %v2434_v32 = vadd.f32 %v2433_v3, %v2385_v20 }
 0x2bd   :  { %v2464_v40 = vmax.f32 %v2434_v32, 0.0 }
 0x2be   :  { %v2337_v56 = vpop.f32.mrf.mxu3 }
 0x2bf   :  { %v2338_v18 = vadd.f32 %v2337_v56, %v2289_v9 }
 0x2c1   :  { %v2387_v26 = vadd.f32 %v2386_v4, %v2338_v18  ;;  %v2306_v56 = vpop.f32.mrf.mxu2 }
 0x2c2   :  { %v2307_v33 = vadd.f32 %v2306_v56, %v5877_v52 }
 0x2c3   :  { %v2389_v16 = vpop.f32.mrf.mxu0  ;;  %v2438_v31 = vpop.f32.mrf.mxu1  ;;  %v2436_v38 = vadd.f32 %v2435_v48, %v2387_v26 }
 0x2c5   :  { %v2465_v13 = vmax.f32 %v2436_v38, 0.0 }
 0x2c6   :  { %v2340_v19 = vpop.f32.mrf.mxu3 }
 0x2c7   :  { %v2477_v49 = vpack.c.bf16 %v2465_v13, %v2464_v40  ;;  %v2341_v55 = vadd.f32 %v2340_v19, %v2292_v61 }
 0x2c9   :  { %2569 = vmatmul.bf16.gmra.mxu2 %v2477_v49  ;;  %v2390_v8 = vadd.f32 %v2389_v16, %v2341_v55  ;;  %v2308_v13 = vpop.f32.mrf.mxu2 }
 0x2ca   :  { %v2309_v11 = vadd.f32 %v2308_v13, %v5879_v27 }
 0x2cb   :  { %v2391_v62 = vpop.f32.mrf.mxu0  ;;  %v2440_v60 = vpop.f32.mrf.mxu1  ;;  %v2439_v23 = vadd.f32 %v2438_v31, %v2390_v8 }
 0x2cd   :  { %v2466_v25 = vmax.f32 %v2439_v23, 0.0 }
 0x2ce   :  { %v2342_v47 = vpop.f32.mrf.mxu3 }
 0x2cf   :  { %v2343_v28 = vadd.f32 %v2342_v47, %v2294_v37 }
 0x2d1   :  { %v2392_v10 = vadd.f32 %v2391_v62, %v2343_v28 }
 0x2d3   :  { %v2394_v45 = vpop.f32.mrf.mxu0  ;;  %v2443_v14 = vpop.f32.mrf.mxu1  ;;  %v2441_v57 = vadd.f32 %v2440_v60, %v2392_v10 }
 0x2d5   :  { %v2467_v24 = vmax.f32 %v2441_v57, 0.0 }
 0x2d6   :  { %v2345_v22 = vpop.f32.mrf.mxu3 }
 0x2d7   :  { %v2478_v41 = vpack.c.bf16 %v2467_v24, %v2466_v25  ;;  %v2346_v59 = vadd.f32 %v2345_v22, %v2297_v12 }
 0x2d9   :  { %2574 = vmatmul.bf16.gmra.mxu2 %v2478_v41  ;;  %v2395_v43 = vadd.f32 %v2394_v45, %v2346_v59 }
 0x2db   :  { %v2396_v44 = vpop.f32.mrf.mxu0  ;;  %v2445_v53 = vpop.f32.mrf.mxu1  ;;  %v2444_v42 = vadd.f32 %v2443_v14, %v2395_v43 }
 0x2dd   :  { %v2468_v3 = vmax.f32 %v2444_v42, 0.0 }
 0x2de   :  { %v2347_v7 = vpop.f32.mrf.mxu3 }
 0x2df   :  { %v2348_v17 = vadd.f32 %v2347_v7, %v2299_v34 }
 0x2e1   :  { %v2397_v58 = vadd.f32 %v2396_v44, %v2348_v17 }
 0x2e3   :  { %v2399_v50 = vpop.f32.mrf.mxu0  ;;  %v2446_v46 = vadd.f32 %v2445_v53, %v2397_v58  ;;  %v2448_v2 = vpop.f32.mrf.mxu1 }
 0x2e5   :  { %v2469_v39 = vmax.f32 %v2446_v46, 0.0 }
 0x2e6   :  { %v2350_v15 = vpop.f32.mrf.mxu3 }
 0x2e7   :  { %v2479_v1 = vpack.c.bf16 %v2469_v39, %v2468_v3  ;;  %v2351_v54 = vadd.f32 %v2350_v15, %v2302_v36 }
 0x2e9   :  { %2579 = vmatmul.bf16.gmra.mxu2 %v2479_v1  ;;  %v2400_v29 = vadd.f32 %v2399_v50, %v2351_v54 }
 0x2eb   :  { %v2401_v51 = vpop.f32.mrf.mxu0  ;;  %v2450_v4 = vpop.f32.mrf.mxu1  ;;  %v2449_v9 = vadd.f32 %v2448_v2, %v2400_v29 }
 0x2ed   :  { %v2470_v5 = vmax.f32 %v2449_v9, 0.0 }
 0x2ee   :  { %v2352_v6 = vpop.f32.mrf.mxu3 }
 0x2ef   :  { %v2353_v48 = vadd.f32 %v2352_v6, %v2304_v0 }
 0x2f1   :  { %v2402_v20 = vadd.f32 %v2401_v51, %v2353_v48 }
 0x2f3   :  { %v2451_v18 = vadd.f32 %v2450_v4, %v2402_v20  ;;  %v2404_v32 = vpop.f32.mrf.mxu0  ;;  %v2453_v38 = vpop.f32.mrf.mxu1 }
 0x2f5   :  { %v2471_v16 = vmax.f32 %v2451_v18, 0.0  ;;  %v3477_v18 = vld [vmem:[%s5910_s7] ss:$0 sm:$0xff] }
 0x2f6   :  { %v2355_v26 = vpop.f32.mrf.mxu3 }
 0x2f7   :  { %v2480_v31 = vpack.c.bf16 %v2471_v16, %v2470_v5  ;;  %v2356_v40 = vadd.f32 %v2355_v26, %v2307_v33 }
 0x2f9   :  { %2584 = vmatmul.bf16.gmra.mxu2 %v2480_v31  ;;  %v2405_v19 = vadd.f32 %v2404_v32, %v2356_v40 }
 0x2fb   :  { %v2406_v62 = vpop.f32.mrf.mxu0  ;;  %v2454_v55 = vadd.f32 %v2453_v38, %v2405_v19  ;;  %v2455_v35 = vpop.f32.mrf.mxu1 }
 0x2fd   :  { %v2472_v8 = vmax.f32 %v2454_v55, 0.0 }
 0x2fe   :  { %v2357_v61 = vpop.f32.mrf.mxu3 }
 0x2ff   :  { %v2358_v49 = vadd.f32 %v2357_v61, %v2309_v11 }
 0x301   :  { %v2407_v60 = vadd.f32 %v2406_v62, %v2358_v49 }
 0x303   :  { %v2456_v37 = vadd.f32 %v2455_v35, %v2407_v60 }
 0x305   :  { %v2473_v47 = vmax.f32 %v2456_v37, 0.0 }
 0x307   :  { %v2481_v28 = vpack.c.bf16 %v2473_v47, %v2472_v8 }
 0x309   :  { %2589 = vmatmul.bf16.gmra.mxu2 %v2481_v28 }
 0x31c   :  { %v2555_v52 = vpop.f32.mrf.mxu2 }
 0x324   :  { %v2557_v45 = vpop.f32.mrf.mxu2 }
 0x325   :  { %v2595_v23 = vadd.f32 %v2557_v45, %v2555_v52 }
 0x32c   :  { %v2560_v10 = vpop.f32.mrf.mxu2 }
 0x32d   :  { %v2596_v14 = vadd.f32 %v2595_v23, %v2560_v10 }
 0x334   :  { %v2562_v57 = vpop.f32.mrf.mxu2 }
 0x335   :  { %v2597_v30 = vadd.f32 %v2596_v14, %v2562_v57 }
 0x33c   :  { %v2565_v27 = vpop.f32.mrf.mxu2 }
 0x33d   :  { %v2598_v25 = vadd.f32 %v2597_v30, %v2565_v27 }
 0x344   :  { %v2567_v24 = vpop.f32.mrf.mxu2 }
 0x345   :  { %v2599_v22 = vadd.f32 %v2598_v25, %v2567_v24 }
 0x34c   :  { %v2570_v12 = vpop.f32.mrf.mxu2 }
 0x34d   :  { %v2600_v41 = vadd.f32 %v2599_v22, %v2570_v12 }
 0x354   :  { %v2572_v44 = vpop.f32.mrf.mxu2 }
 0x355   :  { %v2601_v59 = vadd.f32 %v2600_v41, %v2572_v44 }
 0x357   :  { %v2602_v46 = vrot.slane %v2601_v59, 4 }
 0x359   :  { %v2603_v39 = vadd.f32 %v2602_v46, %v2601_v59 }
 0x35b   :  { %v2604_v21 = vrot.slane %v2603_v39, 2 }
 0x35c   :  { %v2575_v53 = vpop.f32.mrf.mxu2 }
 0x35d   :  { %v2605_v0 = vadd.f32 %v2604_v21, %v2603_v39 }
 0x35f   :  { %v2606_v6 = vrot.slane %v2605_v0, 1 }
 0x361   :  { %v2607_v20 = vadd.f32 %v2606_v6, %v2605_v0 }
 0x363   :  { %v2625_v16 = vadd.f32 %v3477_v18, %v2607_v20 }
 0x364   :  { %v2577_v34 = vpop.f32.mrf.mxu2 }
 0x365   :  { %v2608_v42 = vadd.f32 %v2577_v34, %v2575_v53 }
 0x36c   :  { %v2580_v43 = vpop.f32.mrf.mxu2 }
 0x36d   :  { %v2609_v58 = vadd.f32 %v2608_v42, %v2580_v43 }
 0x374   :  { %v2582_v63 = vpop.f32.mrf.mxu2 }
 0x375   :  { %v2610_v2 = vadd.f32 %v2609_v58, %v2582_v63 }
 0x37c   :  { %v2585_v7 = vpop.f32.mrf.mxu2 }
 0x37d   :  { %v2611_v3 = vadd.f32 %v2610_v2, %v2585_v7 }
 0x384   :  { %v2587_v17 = vpop.f32.mrf.mxu2 }
 0x385   :  { %v2612_v15 = vadd.f32 %v2611_v3, %v2587_v17 }
 0x38c   :  { %v2590_v50 = vpop.f32.mrf.mxu2 }
 0x38d   :  { %v2613_v36 = vadd.f32 %v2612_v15, %v2590_v50 }
 0x394   :  { %v2592_v1 = vpop.f32.mrf.mxu2 }
 0x395   :  { %v2614_v54 = vadd.f32 %v2613_v36, %v2592_v1 }
 0x397   :  { %v2615_v51 = vrot.slane %v2614_v54, 4 }
 0x399   :  { %v2616_v29 = vadd.f32 %v2615_v51, %v2614_v54 }
 0x39b   :  { %v2617_v4 = vrot.slane %v2616_v29, 2 }
 0x39d   :  { %v2618_v48 = vadd.f32 %v2617_v4, %v2616_v29 }
 0x39f   :  { %v2619_v9 = vrot.slane %v2618_v48, 1 }
 0x3a1   :  { %v2620_v56 = vadd.f32 %v2619_v9, %v2618_v48 }
 0x3a3   :  { %v2626_v5 = vadd.f32 %v3477_v18, %v2620_v56 }
 0x3a5   :  { %v2629_v32 = vrot.slane %v2626_v5, 7 }
 0x3a7   :  { %v2631_v26 = vsel %vm2630_vm0, %v2629_v32, %v2625_v16 }
 0x3a8   :  { %2633 = vst [vmem:[#allocation2] sm:$0x3] %v2631_v26 }
 0x3a9   :  { %2644 = dma.vmem_to_hbm [thread:$0]  %s2640_s19, 32, %s2642_s22, [#allocation3]  }
 0x3aa   :  { %3511 = dma.done.wait [#allocation3], 32  }
 0x3ab   :  { %3512 = vsyncadd [#allocation3], 4294967264 }
 0x3ac   :  { %2649 = vsyncpa [#allocation3], 1 }

</bundles_post_ra>
